<compile_context>
chip_gen: v5e
topology: v5e:2x2
jax: 0.10.0
libtpu: 0.0.40
codegen_flags: <defaults>
</compile_context>

<pallas_src>
import jax
import jax.numpy as jnp
import numpy as np
from jax import lax
from jax.experimental import pallas as pl
from jax.experimental.pallas import tpu as pltpu


# ----------------------------- Pallas kernel ------------------------------- #
def _decoder_row_kernel(r0_ref, r1_ref, r2_ref, w_ref, b_ref, o_ref):
    """One grid step = one low-res row -> two output rows (row phases p=0,1).

    r*_ref : (1, 1, Cin, 2W+2) bf16  padded, column-upsampled low-res rows i, i+1, i+2
    w_ref  : (12, Cout, Cin)   bf16  folded (upsample . grouped-3x3 . 1x1) weights,
                                     tap index k = phase*6 + row_tap*3 + col_tap
    b_ref  : (Cout, 1)         f32   folded bias
    o_ref  : (1, 2, Cout, 2W)        output rows 2i and 2i+1 (N,H,C,W layout)
    """
    wo = o_ref.shape[-1]                                   # 2W (lane dim)
    rows = (r0_ref[0, 0], r1_ref[0, 0], r2_ref[0, 0])      # each (Cin, 2W+2)
    bias = b_ref[...]                                      # (Cout, 1) f32
    for p in range(2):                                     # output row phase
        acc = None
        for a in range(2):                                 # low-res row tap
            row = rows[p + a]
            for b in range(3):                             # column tap
                k = p * 6 + a * 3 + b
                part = jnp.dot(w_ref[k], row[:, b:b + wo],
                               preferred_element_type=jnp.float32)   # MXU, f32 acc
                acc = part if acc is None else acc + part
        o_ref[0, p] = jnp.maximum(acc + bias, 0.0).astype(o_ref.dtype)


# ----------------------------- weight folding ------------------------------ #
def _fold_weights(w3, b3, w1, b1):
    """Fold nearest-2x row upsample + grouped 3x3 + 1x1 into 12 dense (Cout, Cin) taps.

    Row phase p of the upsampled image maps the 3 kh taps onto 2 distinct low-res rows
    (row-tap a); column taps stay at output resolution (the input is column-upsampled).
    """
    cout, g = w3.shape[0], w3.shape[1]
    cin = cout * g
    w1_2d = w1.reshape(cout, cout).astype(jnp.float32)
    w3f = w3.astype(jnp.float32)
    # sel[p, a, kh] = 1 iff 3x3 row-tap kh lands on low-res row-tap a for phase p.
    sel = jnp.array([[[1, 0, 0], [0, 1, 1]],
                     [[1, 1, 0], [0, 0, 1]]], jnp.float32)            # (2, 2, 3)
    w3pa = jnp.einsum('pak,oikb->paoib', sel, w3f)                    # (2,2,Cout,g,3)
    wf = jnp.einsum('do,paoib->pabdoi', w1_2d, w3pa)                  # (2,2,3,Cout,Cout,g)
    wf = wf.reshape(2, 2, 3, cout, cin).reshape(12, cout, cin).astype(jnp.bfloat16)
    bf = (w1_2d @ b3.astype(jnp.float32) + b1.astype(jnp.float32)).reshape(cout, 1)
    return wf, bf


# ------------------------------ block wrapper ------------------------------ #
def depthwise_decoder_block(x_nhcw, w3, b3, w1, b1, out_dtype):
    """nearest-2x upsample + grouped 3x3 (pad=1) + 1x1 + ReLU, in (N, H, C, W) layout."""
    N, H, Cin, W = x_nhcw.shape
    Cout = w3.shape[0]
    Wp = 2 * W + 2                      # padded, column-upsampled width
    Wo = 2 * W                          # output width

    # --- glue (only ~2x low-res bytes): bf16 cast + column nearest-upsample + pad --- #
    xc = jnp.repeat(x_nhcw.astype(jnp.bfloat16), 2, axis=3)           # (N, H, Cin, 2W)
    xc = jnp.pad(xc, ((0, 0), (1, 1), (0, 0), (1, 1)))                # (N, H+2, Cin, Wp)

    wf, bf = _fold_weights(w3, b3, w1, b1)

    grid = (N, H)                       # one low-res row per step -> 2 output rows
    out = pl.pallas_call(
        _decoder_row_kernel,
        out_shape=jax.ShapeDtypeStruct((N, 2 * H, Cout, Wo), out_dtype),
        grid_spec=pltpu.PrefetchScalarGridSpec(
            num_scalar_prefetch=0,
            grid=grid,
            in_specs=[
                # three single-row views give the 3-row halo without overlapping blocks
                pl.BlockSpec((1, 1, Cin, Wp), lambda n, i: (n, i, 0, 0)),
                pl.BlockSpec((1, 1, Cin, Wp), lambda n, i: (n, i + 1, 0, 0)),
                pl.BlockSpec((1, 1, Cin, Wp), lambda n, i: (n, i + 2, 0, 0)),
                pl.BlockSpec((12, Cout, Cin), lambda n, i: (0, 0, 0)),
                pl.BlockSpec((Cout, 1), lambda n, i: (0, 0)),
            ],
            out_specs=pl.BlockSpec((1, 2, Cout, Wo), lambda n, i: (n, i, 0, 0)),
        ),
        compiler_params=pltpu.CompilerParams(
            dimension_semantics=("parallel", "parallel"),
        ),
    )(xc, xc, xc, wf, bf)
    return out                                                        # (N, 2H, Cout, 2W)


# --------------------------- Decoder forward pass -------------------------- #
def decoder_forward(x_nchw, params):
    x = jnp.transpose(x_nchw, (0, 2, 1, 3))          # NCHW -> (N, H, C, W) working layout
    for bi, (w3, b3, w1, b1) in enumerate(params):
        last = bi == len(params) - 1
        x = depthwise_decoder_block(
            x, w3, b3, w1, b1,
            out_dtype=jnp.float32 if last else jnp.bfloat16)          # bf16 intermediates
    return jnp.transpose(x, (0, 2, 1, 3))            # back to NCHW


# --------------------------- pure-JAX reference ----------------------------- #
def _ref_block(x, w3, b3, w1, b1):  # x: NCHW, f32
    cout = b3.shape[0]
    y = lax.conv_general_dilated(
        x, w3, (1, 1), ((1, 1), (1, 1)), feature_group_count=cout,
        dimension_numbers=('NCHW', 'OIHW', 'NCHW')) + b3[None, :, None, None]
    y = lax.conv_general_dilated(
        y, w1, (1, 1), ((0, 0), (0, 0)),
        dimension_numbers=('NCHW', 'OIHW', 'NCHW')) + b1[None, :, None, None]
    return jnp.maximum(y, 0.0)


def ref_decoder(x, params):
    for (w3, b3, w1, b1) in params:
        x = jnp.repeat(jnp.repeat(x, 2, axis=2), 2, axis=3)   # nearest 2x upsample
        x = _ref_block(x, w3, b3, w1, b1)
    return x


# ------------------------------- parameters -------------------------------- #
def init_block(key, cin, cout):
    g = cin // cout
    k1, k2, k3, k4 = jax.random.split(key, 4)
    w3 = jax.random.normal(k1, (cout, g, 3, 3), jnp.float32) * 0.1
    b3 = jax.random.normal(k2, (cout,), jnp.float32) * 0.1
    w1 = jax.random.normal(k3, (cout, cout, 1, 1), jnp.float32) * 0.1
    b1 = jax.random.normal(k4, (cout,), jnp.float32) * 0.1
    return (w3, b3, w1, b1)


if __name__ == "__main__":
    # Scaled-down shapes consistent with the module (default 1024 -> [64,64,64];
    # here 32 -> [8,8,8]; groups=out_channels still holds).
    in_channels = 32
    out_channels_list = [8, 8, 8]
    N, H, W = 2, 8, 8

    key = jax.random.PRNGKey(0)
    keys = jax.random.split(key, 1 + len(out_channels_list))
    x = jax.random.normal(keys[0], (N, in_channels, H, W), jnp.float32)

    params = []
    cin = in_channels
    for i, cout in enumerate(out_channels_list):
        params.append(init_block(keys[1 + i], cin, cout))
        cin = cout

    out = jax.jit(decoder_forward)(x, params)
    out = jax.block_until_ready(out)

    assert out.shape == (N, out_channels_list[-1], H * 8, W * 8), out.shape

    ref = ref_decoder(x, params)
    # bf16 matmul operands + bf16 inter-block activations (f32 accumulation everywhere).
    np.testing.assert_allclose(np.asarray(out), np.asarray(ref),
                               rtol=3e-2, atol=3e-2)
    print("KERNEL_OK")
</pallas_src>

<mosaic_0001>
module attributes {stable_mosaic.version = 11 : i64} {
  func.func @_decoder_row_kernel(%arg0: i32, %arg1: i32, %arg2: memref<1x1x32x18xbf16, #tpu.memory_space<vmem>>, %arg3: memref<1x1x32x18xbf16, #tpu.memory_space<vmem>>, %arg4: memref<1x1x32x18xbf16, #tpu.memory_space<vmem>>, %arg5: memref<12x8x32xbf16, #tpu.memory_space<vmem>>, %arg6: memref<8x1xf32, #tpu.memory_space<vmem>>, %arg7: memref<1x2x8x16xbf16, #tpu.memory_space<vmem>>) attributes {dimension_semantics = [#tpu.dimension_semantics<parallel>, #tpu.dimension_semantics<parallel>], iteration_bounds = array<i64: 2, 8>, scalar_prefetch = 0 : i64, scratch_operands = 0 : i64, tpu.core_type = #tpu.core_type<tc>, window_params = [{transform_indices = @transform_0, window_bounds = array<i64: 1, 1, 32, 18>}, {transform_indices = @transform_1, window_bounds = array<i64: 1, 1, 32, 18>}, {transform_indices = @transform_2, window_bounds = array<i64: 1, 1, 32, 18>}, {pipeline_mode = #tpu.pipeline_mode<synchronous>, transform_indices = @transform_3, window_bounds = array<i64: 12, 8, 32>}, {pipeline_mode = #tpu.pipeline_mode<synchronous>, transform_indices = @transform_4, window_bounds = array<i64: 8, 1>}, {transform_indices = @transform_5, window_bounds = array<i64: 1, 2, 8, 16>}]} {
    %c0 = arith.constant 0 : index
    %c0_0 = arith.constant 0 : index
    %c0_1 = arith.constant 0 : index
    %c0_2 = arith.constant 0 : index
    %0 = vector.load %arg2[%c0, %c0_0, %c0_1, %c0_2] : memref<1x1x32x18xbf16, #tpu.memory_space<vmem>>, vector<1x1x32x18xbf16>
    %1 = vector.shape_cast %0 : vector<1x1x32x18xbf16> to vector<32x18xbf16>
    %c0_3 = arith.constant 0 : index
    %c0_4 = arith.constant 0 : index
    %c0_5 = arith.constant 0 : index
    %c0_6 = arith.constant 0 : index
    %2 = vector.load %arg3[%c0_3, %c0_4, %c0_5, %c0_6] : memref<1x1x32x18xbf16, #tpu.memory_space<vmem>>, vector<1x1x32x18xbf16>
    %3 = vector.shape_cast %2 : vector<1x1x32x18xbf16> to vector<32x18xbf16>
    %c0_7 = arith.constant 0 : index
    %c0_8 = arith.constant 0 : index
    %c0_9 = arith.constant 0 : index
    %c0_10 = arith.constant 0 : index
    %4 = vector.load %arg4[%c0_7, %c0_8, %c0_9, %c0_10] : memref<1x1x32x18xbf16, #tpu.memory_space<vmem>>, vector<1x1x32x18xbf16>
    %5 = vector.shape_cast %4 : vector<1x1x32x18xbf16> to vector<32x18xbf16>
    %c0_11 = arith.constant 0 : index
    %c0_12 = arith.constant 0 : index
    %6 = vector.load %arg6[%c0_11, %c0_12] : memref<8x1xf32, #tpu.memory_space<vmem>>, vector<8x1xf32>
    %c0_13 = arith.constant 0 : index
    %c0_14 = arith.constant 0 : index
    %c0_15 = arith.constant 0 : index
    %7 = vector.load %arg5[%c0_13, %c0_14, %c0_15] : memref<12x8x32xbf16, #tpu.memory_space<vmem>>, vector<1x8x32xbf16>
    %8 = vector.shape_cast %7 : vector<1x8x32xbf16> to vector<8x32xbf16>
    %9 = vector.extract_strided_slice %1 {offsets = [0, 0], sizes = [32, 16], strides = [1, 1]} : vector<32x18xbf16> to vector<32x16xbf16>
    %cst = arith.constant dense<0.000000e+00> : vector<8x16xf32>
    %10 = tpu.matmul %8, %9, %cst {dimension_numbers = #tpu.dot_dimension_numbers<[1], [0], [0], [1], [0, 0, 1, 1], [], []>} : vector<8x32xbf16>, vector<32x16xbf16>, vector<8x16xf32> -> vector<8x16xf32>
    %c1 = arith.constant 1 : index
    %c0_16 = arith.constant 0 : index
    %c0_17 = arith.constant 0 : index
    %11 = vector.load %arg5[%c1, %c0_16, %c0_17] : memref<12x8x32xbf16, #tpu.memory_space<vmem>>, vector<1x8x32xbf16>
    %12 = vector.shape_cast %11 : vector<1x8x32xbf16> to vector<8x32xbf16>
    %13 = vector.extract_strided_slice %1 {offsets = [0, 1], sizes = [32, 16], strides = [1, 1]} : vector<32x18xbf16> to vector<32x16xbf16>
    %cst_18 = arith.constant dense<0.000000e+00> : vector<8x16xf32>
    %14 = tpu.matmul %12, %13, %cst_18 {dimension_numbers = #tpu.dot_dimension_numbers<[1], [0], [0], [1], [0, 0, 1, 1], [], []>} : vector<8x32xbf16>, vector<32x16xbf16>, vector<8x16xf32> -> vector<8x16xf32>
    %15 = arith.addf %10, %14 : vector<8x16xf32>
    %c2 = arith.constant 2 : index
    %c0_19 = arith.constant 0 : index
    %c0_20 = arith.constant 0 : index
    %16 = vector.load %arg5[%c2, %c0_19, %c0_20] : memref<12x8x32xbf16, #tpu.memory_space<vmem>>, vector<1x8x32xbf16>
    %17 = vector.shape_cast %16 : vector<1x8x32xbf16> to vector<8x32xbf16>
    %18 = vector.extract_strided_slice %1 {offsets = [0, 2], sizes = [32, 16], strides = [1, 1]} : vector<32x18xbf16> to vector<32x16xbf16>
    %cst_21 = arith.constant dense<0.000000e+00> : vector<8x16xf32>
    %19 = tpu.matmul %17, %18, %cst_21 {dimension_numbers = #tpu.dot_dimension_numbers<[1], [0], [0], [1], [0, 0, 1, 1], [], []>} : vector<8x32xbf16>, vector<32x16xbf16>, vector<8x16xf32> -> vector<8x16xf32>
    %20 = arith.addf %15, %19 : vector<8x16xf32>
    %c3 = arith.constant 3 : index
    %c0_22 = arith.constant 0 : index
    %c0_23 = arith.constant 0 : index
    %21 = vector.load %arg5[%c3, %c0_22, %c0_23] : memref<12x8x32xbf16, #tpu.memory_space<vmem>>, vector<1x8x32xbf16>
    %22 = vector.shape_cast %21 : vector<1x8x32xbf16> to vector<8x32xbf16>
    %23 = vector.extract_strided_slice %3 {offsets = [0, 0], sizes = [32, 16], strides = [1, 1]} : vector<32x18xbf16> to vector<32x16xbf16>
    %cst_24 = arith.constant dense<0.000000e+00> : vector<8x16xf32>
    %24 = tpu.matmul %22, %23, %cst_24 {dimension_numbers = #tpu.dot_dimension_numbers<[1], [0], [0], [1], [0, 0, 1, 1], [], []>} : vector<8x32xbf16>, vector<32x16xbf16>, vector<8x16xf32> -> vector<8x16xf32>
    %25 = arith.addf %20, %24 : vector<8x16xf32>
    %c4 = arith.constant 4 : index
    %c0_25 = arith.constant 0 : index
    %c0_26 = arith.constant 0 : index
    %26 = vector.load %arg5[%c4, %c0_25, %c0_26] : memref<12x8x32xbf16, #tpu.memory_space<vmem>>, vector<1x8x32xbf16>
    %27 = vector.shape_cast %26 : vector<1x8x32xbf16> to vector<8x32xbf16>
    %28 = vector.extract_strided_slice %3 {offsets = [0, 1], sizes = [32, 16], strides = [1, 1]} : vector<32x18xbf16> to vector<32x16xbf16>
    %cst_27 = arith.constant dense<0.000000e+00> : vector<8x16xf32>
    %29 = tpu.matmul %27, %28, %cst_27 {dimension_numbers = #tpu.dot_dimension_numbers<[1], [0], [0], [1], [0, 0, 1, 1], [], []>} : vector<8x32xbf16>, vector<32x16xbf16>, vector<8x16xf32> -> vector<8x16xf32>
    %30 = arith.addf %25, %29 : vector<8x16xf32>
    %c5 = arith.constant 5 : index
    %c0_28 = arith.constant 0 : index
    %c0_29 = arith.constant 0 : index
    %31 = vector.load %arg5[%c5, %c0_28, %c0_29] : memref<12x8x32xbf16, #tpu.memory_space<vmem>>, vector<1x8x32xbf16>
    %32 = vector.shape_cast %31 : vector<1x8x32xbf16> to vector<8x32xbf16>
    %33 = vector.extract_strided_slice %3 {offsets = [0, 2], sizes = [32, 16], strides = [1, 1]} : vector<32x18xbf16> to vector<32x16xbf16>
    %cst_30 = arith.constant dense<0.000000e+00> : vector<8x16xf32>
    %34 = tpu.matmul %32, %33, %cst_30 {dimension_numbers = #tpu.dot_dimension_numbers<[1], [0], [0], [1], [0, 0, 1, 1], [], []>} : vector<8x32xbf16>, vector<32x16xbf16>, vector<8x16xf32> -> vector<8x16xf32>
    %35 = arith.addf %30, %34 : vector<8x16xf32>
    %36 = vector.broadcast %6 : vector<8x1xf32> to vector<8x16xf32>
    %37 = arith.addf %35, %36 : vector<8x16xf32>
    %cst_31 = arith.constant 0.000000e+00 : f32
    %38 = vector.broadcast %cst_31 : f32 to vector<8x16xf32>
    %39 = arith.maximumf %37, %38 : vector<8x16xf32>
    %40 = arith.truncf %39 : vector<8x16xf32> to vector<8x16xbf16>
    %c0_32 = arith.constant 0 : index
    %c0_33 = arith.constant 0 : index
    %c0_34 = arith.constant 0 : index
    %c0_35 = arith.constant 0 : index
    %41 = vector.load %arg7[%c0_32, %c0_33, %c0_34, %c0_35] : memref<1x2x8x16xbf16, #tpu.memory_space<vmem>>, vector<1x1x8x16xbf16>
    %42 = vector.shape_cast %41 : vector<1x1x8x16xbf16> to vector<8x16xbf16>
    %43 = vector.shape_cast %40 : vector<8x16xbf16> to vector<1x1x8x16xbf16>
    tpu.vector_store %arg7[%c0_32, %c0_33, %c0_34, %c0_35], %43 {strides = array<i32>} : memref<1x2x8x16xbf16, #tpu.memory_space<vmem>>, vector<1x1x8x16xbf16>,
    %c6 = arith.constant 6 : index
    %c0_36 = arith.constant 0 : index
    %c0_37 = arith.constant 0 : index
    %44 = vector.load %arg5[%c6, %c0_36, %c0_37] : memref<12x8x32xbf16, #tpu.memory_space<vmem>>, vector<1x8x32xbf16>
    %45 = vector.shape_cast %44 : vector<1x8x32xbf16> to vector<8x32xbf16>
    %46 = vector.extract_strided_slice %3 {offsets = [0, 0], sizes = [32, 16], strides = [1, 1]} : vector<32x18xbf16> to vector<32x16xbf16>
    %cst_38 = arith.constant dense<0.000000e+00> : vector<8x16xf32>
    %47 = tpu.matmul %45, %46, %cst_38 {dimension_numbers = #tpu.dot_dimension_numbers<[1], [0], [0], [1], [0, 0, 1, 1], [], []>} : vector<8x32xbf16>, vector<32x16xbf16>, vector<8x16xf32> -> vector<8x16xf32>
    %c7 = arith.constant 7 : index
    %c0_39 = arith.constant 0 : index
    %c0_40 = arith.constant 0 : index
    %48 = vector.load %arg5[%c7, %c0_39, %c0_40] : memref<12x8x32xbf16, #tpu.memory_space<vmem>>, vector<1x8x32xbf16>
    %49 = vector.shape_cast %48 : vector<1x8x32xbf16> to vector<8x32xbf16>
    %50 = vector.extract_strided_slice %3 {offsets = [0, 1], sizes = [32, 16], strides = [1, 1]} : vector<32x18xbf16> to vector<32x16xbf16>
    %cst_41 = arith.constant dense<0.000000e+00> : vector<8x16xf32>
    %51 = tpu.matmul %49, %50, %cst_41 {dimension_numbers = #tpu.dot_dimension_numbers<[1], [0], [0], [1], [0, 0, 1, 1], [], []>} : vector<8x32xbf16>, vector<32x16xbf16>, vector<8x16xf32> -> vector<8x16xf32>
    %52 = arith.addf %47, %51 : vector<8x16xf32>
    %c8 = arith.constant 8 : index
    %c0_42 = arith.constant 0 : index
    %c0_43 = arith.constant 0 : index
    %53 = vector.load %arg5[%c8, %c0_42, %c0_43] : memref<12x8x32xbf16, #tpu.memory_space<vmem>>, vector<1x8x32xbf16>
    %54 = vector.shape_cast %53 : vector<1x8x32xbf16> to vector<8x32xbf16>
    %55 = vector.extract_strided_slice %3 {offsets = [0, 2], sizes = [32, 16], strides = [1, 1]} : vector<32x18xbf16> to vector<32x16xbf16>
    %cst_44 = arith.constant dense<0.000000e+00> : vector<8x16xf32>
    %56 = tpu.matmul %54, %55, %cst_44 {dimension_numbers = #tpu.dot_dimension_numbers<[1], [0], [0], [1], [0, 0, 1, 1], [], []>} : vector<8x32xbf16>, vector<32x16xbf16>, vector<8x16xf32> -> vector<8x16xf32>
    %57 = arith.addf %52, %56 : vector<8x16xf32>
    %c9 = arith.constant 9 : index
    %c0_45 = arith.constant 0 : index
    %c0_46 = arith.constant 0 : index
    %58 = vector.load %arg5[%c9, %c0_45, %c0_46] : memref<12x8x32xbf16, #tpu.memory_space<vmem>>, vector<1x8x32xbf16>
    %59 = vector.shape_cast %58 : vector<1x8x32xbf16> to vector<8x32xbf16>
    %60 = vector.extract_strided_slice %5 {offsets = [0, 0], sizes = [32, 16], strides = [1, 1]} : vector<32x18xbf16> to vector<32x16xbf16>
    %cst_47 = arith.constant dense<0.000000e+00> : vector<8x16xf32>
    %61 = tpu.matmul %59, %60, %cst_47 {dimension_numbers = #tpu.dot_dimension_numbers<[1], [0], [0], [1], [0, 0, 1, 1], [], []>} : vector<8x32xbf16>, vector<32x16xbf16>, vector<8x16xf32> -> vector<8x16xf32>
    %62 = arith.addf %57, %61 : vector<8x16xf32>
    %c10 = arith.constant 10 : index
    %c0_48 = arith.constant 0 : index
    %c0_49 = arith.constant 0 : index
    %63 = vector.load %arg5[%c10, %c0_48, %c0_49] : memref<12x8x32xbf16, #tpu.memory_space<vmem>>, vector<1x8x32xbf16>
    %64 = vector.shape_cast %63 : vector<1x8x32xbf16> to vector<8x32xbf16>
    %65 = vector.extract_strided_slice %5 {offsets = [0, 1], sizes = [32, 16], strides = [1, 1]} : vector<32x18xbf16> to vector<32x16xbf16>
    %cst_50 = arith.constant dense<0.000000e+00> : vector<8x16xf32>
    %66 = tpu.matmul %64, %65, %cst_50 {dimension_numbers = #tpu.dot_dimension_numbers<[1], [0], [0], [1], [0, 0, 1, 1], [], []>} : vector<8x32xbf16>, vector<32x16xbf16>, vector<8x16xf32> -> vector<8x16xf32>
    %67 = arith.addf %62, %66 : vector<8x16xf32>
    %c11 = arith.constant 11 : index
    %c0_51 = arith.constant 0 : index
    %c0_52 = arith.constant 0 : index
    %68 = vector.load %arg5[%c11, %c0_51, %c0_52] : memref<12x8x32xbf16, #tpu.memory_space<vmem>>, vector<1x8x32xbf16>
    %69 = vector.shape_cast %68 : vector<1x8x32xbf16> to vector<8x32xbf16>
    %70 = vector.extract_strided_slice %5 {offsets = [0, 2], sizes = [32, 16], strides = [1, 1]} : vector<32x18xbf16> to vector<32x16xbf16>
    %cst_53 = arith.constant dense<0.000000e+00> : vector<8x16xf32>
    %71 = tpu.matmul %69, %70, %cst_53 {dimension_numbers = #tpu.dot_dimension_numbers<[1], [0], [0], [1], [0, 0, 1, 1], [], []>} : vector<8x32xbf16>, vector<32x16xbf16>, vector<8x16xf32> -> vector<8x16xf32>
    %72 = arith.addf %67, %71 : vector<8x16xf32>
    %73 = vector.broadcast %6 : vector<8x1xf32> to vector<8x16xf32>
    %74 = arith.addf %72, %73 : vector<8x16xf32>
    %cst_54 = arith.constant 0.000000e+00 : f32
    %75 = vector.broadcast %cst_54 : f32 to vector<8x16xf32>
    %76 = arith.maximumf %74, %75 : vector<8x16xf32>
    %77 = arith.truncf %76 : vector<8x16xf32> to vector<8x16xbf16>
    %c0_55 = arith.constant 0 : index
    %c1_56 = arith.constant 1 : index
    %c0_57 = arith.constant 0 : index
    %c0_58 = arith.constant 0 : index
    %78 = vector.load %arg7[%c0_55, %c1_56, %c0_57, %c0_58] : memref<1x2x8x16xbf16, #tpu.memory_space<vmem>>, vector<1x1x8x16xbf16>
    %79 = vector.shape_cast %78 : vector<1x1x8x16xbf16> to vector<8x16xbf16>
    %80 = vector.shape_cast %77 : vector<8x16xbf16> to vector<1x1x8x16xbf16>
    tpu.vector_store %arg7[%c0_55, %c1_56, %c0_57, %c0_58], %80 {strides = array<i32>} : memref<1x2x8x16xbf16, #tpu.memory_space<vmem>>, vector<1x1x8x16xbf16>,
    return
  }
  func.func @transform_0(%arg0: i32, %arg1: i32) -> (i32, i32, i32, i32) {
    %c0_i32 = arith.constant 0 : i32
    %c0_i32_0 = arith.constant 0 : i32
    %c0_i32_1 = arith.constant 0 : i32
    return %arg0, %arg1, %c0_i32, %c0_i32_0 : i32, i32, i32, i32
  }
  func.func @transform_1(%arg0: i32, %arg1: i32) -> (i32, i32, i32, i32) {
    %c1_i32 = arith.constant 1 : i32
    %0 = arith.addi %arg1, %c1_i32 : i32
    %c0_i32 = arith.constant 0 : i32
    %c0_i32_0 = arith.constant 0 : i32
    %c0_i32_1 = arith.constant 0 : i32
    return %arg0, %0, %c0_i32, %c0_i32_0 : i32, i32, i32, i32
  }
  func.func @transform_2(%arg0: i32, %arg1: i32) -> (i32, i32, i32, i32) {
    %c2_i32 = arith.constant 2 : i32
    %0 = arith.addi %arg1, %c2_i32 : i32
    %c0_i32 = arith.constant 0 : i32
    %c0_i32_0 = arith.constant 0 : i32
    %c0_i32_1 = arith.constant 0 : i32
    return %arg0, %0, %c0_i32, %c0_i32_0 : i32, i32, i32, i32
  }
  func.func @transform_3(%arg0: i32, %arg1: i32) -> (i32, i32, i32) {
    %c0_i32 = arith.constant 0 : i32
    %c0_i32_0 = arith.constant 0 : i32
    %c0_i32_1 = arith.constant 0 : i32
    %c0_i32_2 = arith.constant 0 : i32
    return %c0_i32, %c0_i32_0, %c0_i32_1 : i32, i32, i32
  }
  func.func @transform_4(%arg0: i32, %arg1: i32) -> (i32, i32) {
    %c0_i32 = arith.constant 0 : i32
    %c0_i32_0 = arith.constant 0 : i32
    %c0_i32_1 = arith.constant 0 : i32
    return %c0_i32, %c0_i32_0 : i32, i32
  }
  func.func @transform_5(%arg0: i32, %arg1: i32) -> (i32, i32, i32, i32) {
    %c0_i32 = arith.constant 0 : i32
    %c0_i32_0 = arith.constant 0 : i32
    %c0_i32_1 = arith.constant 0 : i32
    return %arg0, %arg1, %c0_i32, %c0_i32_0 : i32, i32, i32, i32
  }
}

module attributes {stable_mosaic.version = 11 : i64} {
  func.func @_decoder_row_kernel(%arg0: i32, %arg1: i32, %arg2: memref<1x1x8x34xbf16, #tpu.memory_space<vmem>>, %arg3: memref<1x1x8x34xbf16, #tpu.memory_space<vmem>>, %arg4: memref<1x1x8x34xbf16, #tpu.memory_space<vmem>>, %arg5: memref<12x8x8xbf16, #tpu.memory_space<vmem>>, %arg6: memref<8x1xf32, #tpu.memory_space<vmem>>, %arg7: memref<1x2x8x32xbf16, #tpu.memory_space<vmem>>) attributes {dimension_semantics = [#tpu.dimension_semantics<parallel>, #tpu.dimension_semantics<parallel>], iteration_bounds = array<i64: 2, 16>, scalar_prefetch = 0 : i64, scratch_operands = 0 : i64, tpu.core_type = #tpu.core_type<tc>, window_params = [{transform_indices = @transform_0, window_bounds = array<i64: 1, 1, 8, 34>}, {transform_indices = @transform_1, window_bounds = array<i64: 1, 1, 8, 34>}, {transform_indices = @transform_2, window_bounds = array<i64: 1, 1, 8, 34>}, {pipeline_mode = #tpu.pipeline_mode<synchronous>, transform_indices = @transform_3, window_bounds = array<i64: 12, 8, 8>}, {pipeline_mode = #tpu.pipeline_mode<synchronous>, transform_indices = @transform_4, window_bounds = array<i64: 8, 1>}, {transform_indices = @transform_5, window_bounds = array<i64: 1, 2, 8, 32>}]} {
    %c0 = arith.constant 0 : index
    %c0_0 = arith.constant 0 : index
    %c0_1 = arith.constant 0 : index
    %c0_2 = arith.constant 0 : index
    %0 = vector.load %arg2[%c0, %c0_0, %c0_1, %c0_2] : memref<1x1x8x34xbf16, #tpu.memory_space<vmem>>, vector<1x1x8x34xbf16>
    %1 = vector.shape_cast %0 : vector<1x1x8x34xbf16> to vector<8x34xbf16>
    %c0_3 = arith.constant 0 : index
    %c0_4 = arith.constant 0 : index
    %c0_5 = arith.constant 0 : index
    %c0_6 = arith.constant 0 : index
    %2 = vector.load %arg3[%c0_3, %c0_4, %c0_5, %c0_6] : memref<1x1x8x34xbf16, #tpu.memory_space<vmem>>, vector<1x1x8x34xbf16>
    %3 = vector.shape_cast %2 : vector<1x1x8x34xbf16> to vector<8x34xbf16>
    %c0_7 = arith.constant 0 : index
    %c0_8 = arith.constant 0 : index
    %c0_9 = arith.constant 0 : index
    %c0_10 = arith.constant 0 : index
    %4 = vector.load %arg4[%c0_7, %c0_8, %c0_9, %c0_10] : memref<1x1x8x34xbf16, #tpu.memory_space<vmem>>, vector<1x1x8x34xbf16>
    %5 = vector.shape_cast %4 : vector<1x1x8x34xbf16> to vector<8x34xbf16>
    %c0_11 = arith.constant 0 : index
    %c0_12 = arith.constant 0 : index
    %6 = vector.load %arg6[%c0_11, %c0_12] : memref<8x1xf32, #tpu.memory_space<vmem>>, vector<8x1xf32>
    %c0_13 = arith.constant 0 : index
    %c0_14 = arith.constant 0 : index
    %c0_15 = arith.constant 0 : index
    %7 = vector.load %arg5[%c0_13, %c0_14, %c0_15] : memref<12x8x8xbf16, #tpu.memory_space<vmem>>, vector<1x8x8xbf16>
    %8 = vector.shape_cast %7 : vector<1x8x8xbf16> to vector<8x8xbf16>
    %9 = vector.extract_strided_slice %1 {offsets = [0, 0], sizes = [8, 32], strides = [1, 1]} : vector<8x34xbf16> to vector<8x32xbf16>
    %cst = arith.constant dense<0.000000e+00> : vector<8x32xf32>
    %10 = tpu.matmul %8, %9, %cst {dimension_numbers = #tpu.dot_dimension_numbers<[1], [0], [0], [1], [0, 0, 1, 1], [], []>} : vector<8x8xbf16>, vector<8x32xbf16>, vector<8x32xf32> -> vector<8x32xf32>
    %c1 = arith.constant 1 : index
    %c0_16 = arith.constant 0 : index
    %c0_17 = arith.constant 0 : index
    %11 = vector.load %arg5[%c1, %c0_16, %c0_17] : memref<12x8x8xbf16, #tpu.memory_space<vmem>>, vector<1x8x8xbf16>
    %12 = vector.shape_cast %11 : vector<1x8x8xbf16> to vector<8x8xbf16>
    %13 = vector.extract_strided_slice %1 {offsets = [0, 1], sizes = [8, 32], strides = [1, 1]} : vector<8x34xbf16> to vector<8x32xbf16>
    %cst_18 = arith.constant dense<0.000000e+00> : vector<8x32xf32>
    %14 = tpu.matmul %12, %13, %cst_18 {dimension_numbers = #tpu.dot_dimension_numbers<[1], [0], [0], [1], [0, 0, 1, 1], [], []>} : vector<8x8xbf16>, vector<8x32xbf16>, vector<8x32xf32> -> vector<8x32xf32>
    %15 = arith.addf %10, %14 : vector<8x32xf32>
    %c2 = arith.constant 2 : index
    %c0_19 = arith.constant 0 : index
    %c0_20 = arith.constant 0 : index
    %16 = vector.load %arg5[%c2, %c0_19, %c0_20] : memref<12x8x8xbf16, #tpu.memory_space<vmem>>, vector<1x8x8xbf16>
    %17 = vector.shape_cast %16 : vector<1x8x8xbf16> to vector<8x8xbf16>
    %18 = vector.extract_strided_slice %1 {offsets = [0, 2], sizes = [8, 32], strides = [1, 1]} : vector<8x34xbf16> to vector<8x32xbf16>
    %cst_21 = arith.constant dense<0.000000e+00> : vector<8x32xf32>
    %19 = tpu.matmul %17, %18, %cst_21 {dimension_numbers = #tpu.dot_dimension_numbers<[1], [0], [0], [1], [0, 0, 1, 1], [], []>} : vector<8x8xbf16>, vector<8x32xbf16>, vector<8x32xf32> -> vector<8x32xf32>
    %20 = arith.addf %15, %19 : vector<8x32xf32>
    %c3 = arith.constant 3 : index
    %c0_22 = arith.constant 0 : index
    %c0_23 = arith.constant 0 : index
    %21 = vector.load %arg5[%c3, %c0_22, %c0_23] : memref<12x8x8xbf16, #tpu.memory_space<vmem>>, vector<1x8x8xbf16>
    %22 = vector.shape_cast %21 : vector<1x8x8xbf16> to vector<8x8xbf16>
    %23 = vector.extract_strided_slice %3 {offsets = [0, 0], sizes = [8, 32], strides = [1, 1]} : vector<8x34xbf16> to vector<8x32xbf16>
    %cst_24 = arith.constant dense<0.000000e+00> : vector<8x32xf32>
    %24 = tpu.matmul %22, %23, %cst_24 {dimension_numbers = #tpu.dot_dimension_numbers<[1], [0], [0], [1], [0, 0, 1, 1], [], []>} : vector<8x8xbf16>, vector<8x32xbf16>, vector<8x32xf32> -> vector<8x32xf32>
    %25 = arith.addf %20, %24 : vector<8x32xf32>
    %c4 = arith.constant 4 : index
    %c0_25 = arith.constant 0 : index
    %c0_26 = arith.constant 0 : index
    %26 = vector.load %arg5[%c4, %c0_25, %c0_26] : memref<12x8x8xbf16, #tpu.memory_space<vmem>>, vector<1x8x8xbf16>
    %27 = vector.shape_cast %26 : vector<1x8x8xbf16> to vector<8x8xbf16>
    %28 = vector.extract_strided_slice %3 {offsets = [0, 1], sizes = [8, 32], strides = [1, 1]} : vector<8x34xbf16> to vector<8x32xbf16>
    %cst_27 = arith.constant dense<0.000000e+00> : vector<8x32xf32>
    %29 = tpu.matmul %27, %28, %cst_27 {dimension_numbers = #tpu.dot_dimension_numbers<[1], [0], [0], [1], [0, 0, 1, 1], [], []>} : vector<8x8xbf16>, vector<8x32xbf16>, vector<8x32xf32> -> vector<8x32xf32>
    %30 = arith.addf %25, %29 : vector<8x32xf32>
    %c5 = arith.constant 5 : index
    %c0_28 = arith.constant 0 : index
    %c0_29 = arith.constant 0 : index
    %31 = vector.load %arg5[%c5, %c0_28, %c0_29] : memref<12x8x8xbf16, #tpu.memory_space<vmem>>, vector<1x8x8xbf16>
    %32 = vector.shape_cast %31 : vector<1x8x8xbf16> to vector<8x8xbf16>
    %33 = vector.extract_strided_slice %3 {offsets = [0, 2], sizes = [8, 32], strides = [1, 1]} : vector<8x34xbf16> to vector<8x32xbf16>
    %cst_30 = arith.constant dense<0.000000e+00> : vector<8x32xf32>
    %34 = tpu.matmul %32, %33, %cst_30 {dimension_numbers = #tpu.dot_dimension_numbers<[1], [0], [0], [1], [0, 0, 1, 1], [], []>} : vector<8x8xbf16>, vector<8x32xbf16>, vector<8x32xf32> -> vector<8x32xf32>
    %35 = arith.addf %30, %34 : vector<8x32xf32>
    %36 = vector.broadcast %6 : vector<8x1xf32> to vector<8x32xf32>
    %37 = arith.addf %35, %36 : vector<8x32xf32>
    %cst_31 = arith.constant 0.000000e+00 : f32
    %38 = vector.broadcast %cst_31 : f32 to vector<8x32xf32>
    %39 = arith.maximumf %37, %38 : vector<8x32xf32>
    %40 = arith.truncf %39 : vector<8x32xf32> to vector<8x32xbf16>
    %c0_32 = arith.constant 0 : index
    %c0_33 = arith.constant 0 : index
    %c0_34 = arith.constant 0 : index
    %c0_35 = arith.constant 0 : index
    %41 = vector.load %arg7[%c0_32, %c0_33, %c0_34, %c0_35] : memref<1x2x8x32xbf16, #tpu.memory_space<vmem>>, vector<1x1x8x32xbf16>
    %42 = vector.shape_cast %41 : vector<1x1x8x32xbf16> to vector<8x32xbf16>
    %43 = vector.shape_cast %40 : vector<8x32xbf16> to vector<1x1x8x32xbf16>
    tpu.vector_store %arg7[%c0_32, %c0_33, %c0_34, %c0_35], %43 {strides = array<i32>} : memref<1x2x8x32xbf16, #tpu.memory_space<vmem>>, vector<1x1x8x32xbf16>,
    %c6 = arith.constant 6 : index
    %c0_36 = arith.constant 0 : index
    %c0_37 = arith.constant 0 : index
    %44 = vector.load %arg5[%c6, %c0_36, %c0_37] : memref<12x8x8xbf16, #tpu.memory_space<vmem>>, vector<1x8x8xbf16>
    %45 = vector.shape_cast %44 : vector<1x8x8xbf16> to vector<8x8xbf16>
    %46 = vector.extract_strided_slice %3 {offsets = [0, 0], sizes = [8, 32], strides = [1, 1]} : vector<8x34xbf16> to vector<8x32xbf16>
    %cst_38 = arith.constant dense<0.000000e+00> : vector<8x32xf32>
    %47 = tpu.matmul %45, %46, %cst_38 {dimension_numbers = #tpu.dot_dimension_numbers<[1], [0], [0], [1], [0, 0, 1, 1], [], []>} : vector<8x8xbf16>, vector<8x32xbf16>, vector<8x32xf32> -> vector<8x32xf32>
    %c7 = arith.constant 7 : index
    %c0_39 = arith.constant 0 : index
    %c0_40 = arith.constant 0 : index
    %48 = vector.load %arg5[%c7, %c0_39, %c0_40] : memref<12x8x8xbf16, #tpu.memory_space<vmem>>, vector<1x8x8xbf16>
    %49 = vector.shape_cast %48 : vector<1x8x8xbf16> to vector<8x8xbf16>
    %50 = vector.extract_strided_slice %3 {offsets = [0, 1], sizes = [8, 32], strides = [1, 1]} : vector<8x34xbf16> to vector<8x32xbf16>
    %cst_41 = arith.constant dense<0.000000e+00> : vector<8x32xf32>
    %51 = tpu.matmul %49, %50, %cst_41 {dimension_numbers = #tpu.dot_dimension_numbers<[1], [0], [0], [1], [0, 0, 1, 1], [], []>} : vector<8x8xbf16>, vector<8x32xbf16>, vector<8x32xf32> -> vector<8x32xf32>
    %52 = arith.addf %47, %51 : vector<8x32xf32>
    %c8 = arith.constant 8 : index
    %c0_42 = arith.constant 0 : index
    %c0_43 = arith.constant 0 : index
    %53 = vector.load %arg5[%c8, %c0_42, %c0_43] : memref<12x8x8xbf16, #tpu.memory_space<vmem>>, vector<1x8x8xbf16>
    %54 = vector.shape_cast %53 : vector<1x8x8xbf16> to vector<8x8xbf16>
    %55 = vector.extract_strided_slice %3 {offsets = [0, 2], sizes = [8, 32], strides = [1, 1]} : vector<8x34xbf16> to vector<8x32xbf16>
    %cst_44 = arith.constant dense<0.000000e+00> : vector<8x32xf32>
    %56 = tpu.matmul %54, %55, %cst_44 {dimension_numbers = #tpu.dot_dimension_numbers<[1], [0], [0], [1], [0, 0, 1, 1], [], []>} : vector<8x8xbf16>, vector<8x32xbf16>, vector<8x32xf32> -> vector<8x32xf32>
    %57 = arith.addf %52, %56 : vector<8x32xf32>
    %c9 = arith.constant 9 : index
    %c0_45 = arith.constant 0 : index
    %c0_46 = arith.constant 0 : index
    %58 = vector.load %arg5[%c9, %c0_45, %c0_46] : memref<12x8x8xbf16, #tpu.memory_space<vmem>>, vector<1x8x8xbf16>
    %59 = vector.shape_cast %58 : vector<1x8x8xbf16> to vector<8x8xbf16>
    %60 = vector.extract_strided_slice %5 {offsets = [0, 0], sizes = [8, 32], strides = [1, 1]} : vector<8x34xbf16> to vector<8x32xbf16>
    %cst_47 = arith.constant dense<0.000000e+00> : vector<8x32xf32>
    %61 = tpu.matmul %59, %60, %cst_47 {dimension_numbers = #tpu.dot_dimension_numbers<[1], [0], [0], [1], [0, 0, 1, 1], [], []>} : vector<8x8xbf16>, vector<8x32xbf16>, vector<8x32xf32> -> vector<8x32xf32>
    %62 = arith.addf %57, %61 : vector<8x32xf32>
    %c10 = arith.constant 10 : index
    %c0_48 = arith.constant 0 : index
    %c0_49 = arith.constant 0 : index
    %63 = vector.load %arg5[%c10, %c0_48, %c0_49] : memref<12x8x8xbf16, #tpu.memory_space<vmem>>, vector<1x8x8xbf16>
    %64 = vector.shape_cast %63 : vector<1x8x8xbf16> to vector<8x8xbf16>
    %65 = vector.extract_strided_slice %5 {offsets = [0, 1], sizes = [8, 32], strides = [1, 1]} : vector<8x34xbf16> to vector<8x32xbf16>
    %cst_50 = arith.constant dense<0.000000e+00> : vector<8x32xf32>
    %66 = tpu.matmul %64, %65, %cst_50 {dimension_numbers = #tpu.dot_dimension_numbers<[1], [0], [0], [1], [0, 0, 1, 1], [], []>} : vector<8x8xbf16>, vector<8x32xbf16>, vector<8x32xf32> -> vector<8x32xf32>
    %67 = arith.addf %62, %66 : vector<8x32xf32>
    %c11 = arith.constant 11 : index
    %c0_51 = arith.constant 0 : index
    %c0_52 = arith.constant 0 : index
    %68 = vector.load %arg5[%c11, %c0_51, %c0_52] : memref<12x8x8xbf16, #tpu.memory_space<vmem>>, vector<1x8x8xbf16>
    %69 = vector.shape_cast %68 : vector<1x8x8xbf16> to vector<8x8xbf16>
    %70 = vector.extract_strided_slice %5 {offsets = [0, 2], sizes = [8, 32], strides = [1, 1]} : vector<8x34xbf16> to vector<8x32xbf16>
    %cst_53 = arith.constant dense<0.000000e+00> : vector<8x32xf32>
    %71 = tpu.matmul %69, %70, %cst_53 {dimension_numbers = #tpu.dot_dimension_numbers<[1], [0], [0], [1], [0, 0, 1, 1], [], []>} : vector<8x8xbf16>, vector<8x32xbf16>, vector<8x32xf32> -> vector<8x32xf32>
    %72 = arith.addf %67, %71 : vector<8x32xf32>
    %73 = vector.broadcast %6 : vector<8x1xf32> to vector<8x32xf32>
    %74 = arith.addf %72, %73 : vector<8x32xf32>
    %cst_54 = arith.constant 0.000000e+00 : f32
    %75 = vector.broadcast %cst_54 : f32 to vector<8x32xf32>
    %76 = arith.maximumf %74, %75 : vector<8x32xf32>
    %77 = arith.truncf %76 : vector<8x32xf32> to vector<8x32xbf16>
    %c0_55 = arith.constant 0 : index
    %c1_56 = arith.constant 1 : index
    %c0_57 = arith.constant 0 : index
    %c0_58 = arith.constant 0 : index
    %78 = vector.load %arg7[%c0_55, %c1_56, %c0_57, %c0_58] : memref<1x2x8x32xbf16, #tpu.memory_space<vmem>>, vector<1x1x8x32xbf16>
    %79 = vector.shape_cast %78 : vector<1x1x8x32xbf16> to vector<8x32xbf16>
    %80 = vector.shape_cast %77 : vector<8x32xbf16> to vector<1x1x8x32xbf16>
    tpu.vector_store %arg7[%c0_55, %c1_56, %c0_57, %c0_58], %80 {strides = array<i32>} : memref<1x2x8x32xbf16, #tpu.memory_space<vmem>>, vector<1x1x8x32xbf16>,
    return
  }
  func.func @transform_0(%arg0: i32, %arg1: i32) -> (i32, i32, i32, i32) {
    %c0_i32 = arith.constant 0 : i32
    %c0_i32_0 = arith.constant 0 : i32
    %c0_i32_1 = arith.constant 0 : i32
    return %arg0, %arg1, %c0_i32, %c0_i32_0 : i32, i32, i32, i32
  }
  func.func @transform_1(%arg0: i32, %arg1: i32) -> (i32, i32, i32, i32) {
    %c1_i32 = arith.constant 1 : i32
    %0 = arith.addi %arg1, %c1_i32 : i32
    %c0_i32 = arith.constant 0 : i32
    %c0_i32_0 = arith.constant 0 : i32
    %c0_i32_1 = arith.constant 0 : i32
    return %arg0, %0, %c0_i32, %c0_i32_0 : i32, i32, i32, i32
  }
  func.func @transform_2(%arg0: i32, %arg1: i32) -> (i32, i32, i32, i32) {
    %c2_i32 = arith.constant 2 : i32
    %0 = arith.addi %arg1, %c2_i32 : i32
    %c0_i32 = arith.constant 0 : i32
    %c0_i32_0 = arith.constant 0 : i32
    %c0_i32_1 = arith.constant 0 : i32
    return %arg0, %0, %c0_i32, %c0_i32_0 : i32, i32, i32, i32
  }
  func.func @transform_3(%arg0: i32, %arg1: i32) -> (i32, i32, i32) {
    %c0_i32 = arith.constant 0 : i32
    %c0_i32_0 = arith.constant 0 : i32
    %c0_i32_1 = arith.constant 0 : i32
    %c0_i32_2 = arith.constant 0 : i32
    return %c0_i32, %c0_i32_0, %c0_i32_1 : i32, i32, i32
  }
  func.func @transform_4(%arg0: i32, %arg1: i32) -> (i32, i32) {
    %c0_i32 = arith.constant 0 : i32
    %c0_i32_0 = arith.constant 0 : i32
    %c0_i32_1 = arith.constant 0 : i32
    return %c0_i32, %c0_i32_0 : i32, i32
  }
  func.func @transform_5(%arg0: i32, %arg1: i32) -> (i32, i32, i32, i32) {
    %c0_i32 = arith.constant 0 : i32
    %c0_i32_0 = arith.constant 0 : i32
    %c0_i32_1 = arith.constant 0 : i32
    return %arg0, %arg1, %c0_i32, %c0_i32_0 : i32, i32, i32, i32
  }
}

module attributes {stable_mosaic.version = 11 : i64} {
  func.func @_decoder_row_kernel(%arg0: i32, %arg1: i32, %arg2: memref<1x1x8x66xbf16, #tpu.memory_space<vmem>>, %arg3: memref<1x1x8x66xbf16, #tpu.memory_space<vmem>>, %arg4: memref<1x1x8x66xbf16, #tpu.memory_space<vmem>>, %arg5: memref<12x8x8xbf16, #tpu.memory_space<vmem>>, %arg6: memref<8x1xf32, #tpu.memory_space<vmem>>, %arg7: memref<1x2x8x64xf32, #tpu.memory_space<vmem>>) attributes {dimension_semantics = [#tpu.dimension_semantics<parallel>, #tpu.dimension_semantics<parallel>], iteration_bounds = array<i64: 2, 32>, scalar_prefetch = 0 : i64, scratch_operands = 0 : i64, tpu.core_type = #tpu.core_type<tc>, window_params = [{transform_indices = @transform_0, window_bounds = array<i64: 1, 1, 8, 66>}, {transform_indices = @transform_1, window_bounds = array<i64: 1, 1, 8, 66>}, {transform_indices = @transform_2, window_bounds = array<i64: 1, 1, 8, 66>}, {pipeline_mode = #tpu.pipeline_mode<synchronous>, transform_indices = @transform_3, window_bounds = array<i64: 12, 8, 8>}, {pipeline_mode = #tpu.pipeline_mode<synchronous>, transform_indices = @transform_4, window_bounds = array<i64: 8, 1>}, {transform_indices = @transform_5, window_bounds = array<i64: 1, 2, 8, 64>}]} {
    %c0 = arith.constant 0 : index
    %c0_0 = arith.constant 0 : index
    %c0_1 = arith.constant 0 : index
    %c0_2 = arith.constant 0 : index
    %0 = vector.load %arg2[%c0, %c0_0, %c0_1, %c0_2] : memref<1x1x8x66xbf16, #tpu.memory_space<vmem>>, vector<1x1x8x66xbf16>
    %1 = vector.shape_cast %0 : vector<1x1x8x66xbf16> to vector<8x66xbf16>
    %c0_3 = arith.constant 0 : index
    %c0_4 = arith.constant 0 : index
    %c0_5 = arith.constant 0 : index
    %c0_6 = arith.constant 0 : index
    %2 = vector.load %arg3[%c0_3, %c0_4, %c0_5, %c0_6] : memref<1x1x8x66xbf16, #tpu.memory_space<vmem>>, vector<1x1x8x66xbf16>
    %3 = vector.shape_cast %2 : vector<1x1x8x66xbf16> to vector<8x66xbf16>
    %c0_7 = arith.constant 0 : index
    %c0_8 = arith.constant 0 : index
    %c0_9 = arith.constant 0 : index
    %c0_10 = arith.constant 0 : index
    %4 = vector.load %arg4[%c0_7, %c0_8, %c0_9, %c0_10] : memref<1x1x8x66xbf16, #tpu.memory_space<vmem>>, vector<1x1x8x66xbf16>
    %5 = vector.shape_cast %4 : vector<1x1x8x66xbf16> to vector<8x66xbf16>
    %c0_11 = arith.constant 0 : index
    %c0_12 = arith.constant 0 : index
    %6 = vector.load %arg6[%c0_11, %c0_12] : memref<8x1xf32, #tpu.memory_space<vmem>>, vector<8x1xf32>
    %c0_13 = arith.constant 0 : index
    %c0_14 = arith.constant 0 : index
    %c0_15 = arith.constant 0 : index
    %7 = vector.load %arg5[%c0_13, %c0_14, %c0_15] : memref<12x8x8xbf16, #tpu.memory_space<vmem>>, vector<1x8x8xbf16>
    %8 = vector.shape_cast %7 : vector<1x8x8xbf16> to vector<8x8xbf16>
    %9 = vector.extract_strided_slice %1 {offsets = [0, 0], sizes = [8, 64], strides = [1, 1]} : vector<8x66xbf16> to vector<8x64xbf16>
    %cst = arith.constant dense<0.000000e+00> : vector<8x64xf32>
    %10 = tpu.matmul %8, %9, %cst {dimension_numbers = #tpu.dot_dimension_numbers<[1], [0], [0], [1], [0, 0, 1, 1], [], []>} : vector<8x8xbf16>, vector<8x64xbf16>, vector<8x64xf32> -> vector<8x64xf32>
    %c1 = arith.constant 1 : index
    %c0_16 = arith.constant 0 : index
    %c0_17 = arith.constant 0 : index
    %11 = vector.load %arg5[%c1, %c0_16, %c0_17] : memref<12x8x8xbf16, #tpu.memory_space<vmem>>, vector<1x8x8xbf16>
    %12 = vector.shape_cast %11 : vector<1x8x8xbf16> to vector<8x8xbf16>
    %13 = vector.extract_strided_slice %1 {offsets = [0, 1], sizes = [8, 64], strides = [1, 1]} : vector<8x66xbf16> to vector<8x64xbf16>
    %cst_18 = arith.constant dense<0.000000e+00> : vector<8x64xf32>
    %14 = tpu.matmul %12, %13, %cst_18 {dimension_numbers = #tpu.dot_dimension_numbers<[1], [0], [0], [1], [0, 0, 1, 1], [], []>} : vector<8x8xbf16>, vector<8x64xbf16>, vector<8x64xf32> -> vector<8x64xf32>
    %15 = arith.addf %10, %14 : vector<8x64xf32>
    %c2 = arith.constant 2 : index
    %c0_19 = arith.constant 0 : index
    %c0_20 = arith.constant 0 : index
    %16 = vector.load %arg5[%c2, %c0_19, %c0_20] : memref<12x8x8xbf16, #tpu.memory_space<vmem>>, vector<1x8x8xbf16>
    %17 = vector.shape_cast %16 : vector<1x8x8xbf16> to vector<8x8xbf16>
    %18 = vector.extract_strided_slice %1 {offsets = [0, 2], sizes = [8, 64], strides = [1, 1]} : vector<8x66xbf16> to vector<8x64xbf16>
    %cst_21 = arith.constant dense<0.000000e+00> : vector<8x64xf32>
    %19 = tpu.matmul %17, %18, %cst_21 {dimension_numbers = #tpu.dot_dimension_numbers<[1], [0], [0], [1], [0, 0, 1, 1], [], []>} : vector<8x8xbf16>, vector<8x64xbf16>, vector<8x64xf32> -> vector<8x64xf32>
    %20 = arith.addf %15, %19 : vector<8x64xf32>
    %c3 = arith.constant 3 : index
    %c0_22 = arith.constant 0 : index
    %c0_23 = arith.constant 0 : index
    %21 = vector.load %arg5[%c3, %c0_22, %c0_23] : memref<12x8x8xbf16, #tpu.memory_space<vmem>>, vector<1x8x8xbf16>
    %22 = vector.shape_cast %21 : vector<1x8x8xbf16> to vector<8x8xbf16>
    %23 = vector.extract_strided_slice %3 {offsets = [0, 0], sizes = [8, 64], strides = [1, 1]} : vector<8x66xbf16> to vector<8x64xbf16>
    %cst_24 = arith.constant dense<0.000000e+00> : vector<8x64xf32>
    %24 = tpu.matmul %22, %23, %cst_24 {dimension_numbers = #tpu.dot_dimension_numbers<[1], [0], [0], [1], [0, 0, 1, 1], [], []>} : vector<8x8xbf16>, vector<8x64xbf16>, vector<8x64xf32> -> vector<8x64xf32>
    %25 = arith.addf %20, %24 : vector<8x64xf32>
    %c4 = arith.constant 4 : index
    %c0_25 = arith.constant 0 : index
    %c0_26 = arith.constant 0 : index
    %26 = vector.load %arg5[%c4, %c0_25, %c0_26] : memref<12x8x8xbf16, #tpu.memory_space<vmem>>, vector<1x8x8xbf16>
    %27 = vector.shape_cast %26 : vector<1x8x8xbf16> to vector<8x8xbf16>
    %28 = vector.extract_strided_slice %3 {offsets = [0, 1], sizes = [8, 64], strides = [1, 1]} : vector<8x66xbf16> to vector<8x64xbf16>
    %cst_27 = arith.constant dense<0.000000e+00> : vector<8x64xf32>
    %29 = tpu.matmul %27, %28, %cst_27 {dimension_numbers = #tpu.dot_dimension_numbers<[1], [0], [0], [1], [0, 0, 1, 1], [], []>} : vector<8x8xbf16>, vector<8x64xbf16>, vector<8x64xf32> -> vector<8x64xf32>
    %30 = arith.addf %25, %29 : vector<8x64xf32>
    %c5 = arith.constant 5 : index
    %c0_28 = arith.constant 0 : index
    %c0_29 = arith.constant 0 : index
    %31 = vector.load %arg5[%c5, %c0_28, %c0_29] : memref<12x8x8xbf16, #tpu.memory_space<vmem>>, vector<1x8x8xbf16>
    %32 = vector.shape_cast %31 : vector<1x8x8xbf16> to vector<8x8xbf16>
    %33 = vector.extract_strided_slice %3 {offsets = [0, 2], sizes = [8, 64], strides = [1, 1]} : vector<8x66xbf16> to vector<8x64xbf16>
    %cst_30 = arith.constant dense<0.000000e+00> : vector<8x64xf32>
    %34 = tpu.matmul %32, %33, %cst_30 {dimension_numbers = #tpu.dot_dimension_numbers<[1], [0], [0], [1], [0, 0, 1, 1], [], []>} : vector<8x8xbf16>, vector<8x64xbf16>, vector<8x64xf32> -> vector<8x64xf32>
    %35 = arith.addf %30, %34 : vector<8x64xf32>
    %36 = vector.broadcast %6 : vector<8x1xf32> to vector<8x64xf32>
    %37 = arith.addf %35, %36 : vector<8x64xf32>
    %cst_31 = arith.constant 0.000000e+00 : f32
    %38 = vector.broadcast %cst_31 : f32 to vector<8x64xf32>
    %39 = arith.maximumf %37, %38 : vector<8x64xf32>
    %c0_32 = arith.constant 0 : index
    %c0_33 = arith.constant 0 : index
    %c0_34 = arith.constant 0 : index
    %c0_35 = arith.constant 0 : index
    %40 = vector.load %arg7[%c0_32, %c0_33, %c0_34, %c0_35] : memref<1x2x8x64xf32, #tpu.memory_space<vmem>>, vector<1x1x8x64xf32>
    %41 = vector.shape_cast %40 : vector<1x1x8x64xf32> to vector<8x64xf32>
    %42 = vector.shape_cast %39 : vector<8x64xf32> to vector<1x1x8x64xf32>
    tpu.vector_store %arg7[%c0_32, %c0_33, %c0_34, %c0_35], %42 {strides = array<i32>} : memref<1x2x8x64xf32, #tpu.memory_space<vmem>>, vector<1x1x8x64xf32>,
    %c6 = arith.constant 6 : index
    %c0_36 = arith.constant 0 : index
    %c0_37 = arith.constant 0 : index
    %43 = vector.load %arg5[%c6, %c0_36, %c0_37] : memref<12x8x8xbf16, #tpu.memory_space<vmem>>, vector<1x8x8xbf16>
    %44 = vector.shape_cast %43 : vector<1x8x8xbf16> to vector<8x8xbf16>
    %45 = vector.extract_strided_slice %3 {offsets = [0, 0], sizes = [8, 64], strides = [1, 1]} : vector<8x66xbf16> to vector<8x64xbf16>
    %cst_38 = arith.constant dense<0.000000e+00> : vector<8x64xf32>
    %46 = tpu.matmul %44, %45, %cst_38 {dimension_numbers = #tpu.dot_dimension_numbers<[1], [0], [0], [1], [0, 0, 1, 1], [], []>} : vector<8x8xbf16>, vector<8x64xbf16>, vector<8x64xf32> -> vector<8x64xf32>
    %c7 = arith.constant 7 : index
    %c0_39 = arith.constant 0 : index
    %c0_40 = arith.constant 0 : index
    %47 = vector.load %arg5[%c7, %c0_39, %c0_40] : memref<12x8x8xbf16, #tpu.memory_space<vmem>>, vector<1x8x8xbf16>
    %48 = vector.shape_cast %47 : vector<1x8x8xbf16> to vector<8x8xbf16>
    %49 = vector.extract_strided_slice %3 {offsets = [0, 1], sizes = [8, 64], strides = [1, 1]} : vector<8x66xbf16> to vector<8x64xbf16>
    %cst_41 = arith.constant dense<0.000000e+00> : vector<8x64xf32>
    %50 = tpu.matmul %48, %49, %cst_41 {dimension_numbers = #tpu.dot_dimension_numbers<[1], [0], [0], [1], [0, 0, 1, 1], [], []>} : vector<8x8xbf16>, vector<8x64xbf16>, vector<8x64xf32> -> vector<8x64xf32>
    %51 = arith.addf %46, %50 : vector<8x64xf32>
    %c8 = arith.constant 8 : index
    %c0_42 = arith.constant 0 : index
    %c0_43 = arith.constant 0 : index
    %52 = vector.load %arg5[%c8, %c0_42, %c0_43] : memref<12x8x8xbf16, #tpu.memory_space<vmem>>, vector<1x8x8xbf16>
    %53 = vector.shape_cast %52 : vector<1x8x8xbf16> to vector<8x8xbf16>
    %54 = vector.extract_strided_slice %3 {offsets = [0, 2], sizes = [8, 64], strides = [1, 1]} : vector<8x66xbf16> to vector<8x64xbf16>
    %cst_44 = arith.constant dense<0.000000e+00> : vector<8x64xf32>
    %55 = tpu.matmul %53, %54, %cst_44 {dimension_numbers = #tpu.dot_dimension_numbers<[1], [0], [0], [1], [0, 0, 1, 1], [], []>} : vector<8x8xbf16>, vector<8x64xbf16>, vector<8x64xf32> -> vector<8x64xf32>
    %56 = arith.addf %51, %55 : vector<8x64xf32>
    %c9 = arith.constant 9 : index
    %c0_45 = arith.constant 0 : index
    %c0_46 = arith.constant 0 : index
    %57 = vector.load %arg5[%c9, %c0_45, %c0_46] : memref<12x8x8xbf16, #tpu.memory_space<vmem>>, vector<1x8x8xbf16>
    %58 = vector.shape_cast %57 : vector<1x8x8xbf16> to vector<8x8xbf16>
    %59 = vector.extract_strided_slice %5 {offsets = [0, 0], sizes = [8, 64], strides = [1, 1]} : vector<8x66xbf16> to vector<8x64xbf16>
    %cst_47 = arith.constant dense<0.000000e+00> : vector<8x64xf32>
    %60 = tpu.matmul %58, %59, %cst_47 {dimension_numbers = #tpu.dot_dimension_numbers<[1], [0], [0], [1], [0, 0, 1, 1], [], []>} : vector<8x8xbf16>, vector<8x64xbf16>, vector<8x64xf32> -> vector<8x64xf32>
    %61 = arith.addf %56, %60 : vector<8x64xf32>
    %c10 = arith.constant 10 : index
    %c0_48 = arith.constant 0 : index
    %c0_49 = arith.constant 0 : index
    %62 = vector.load %arg5[%c10, %c0_48, %c0_49] : memref<12x8x8xbf16, #tpu.memory_space<vmem>>, vector<1x8x8xbf16>
    %63 = vector.shape_cast %62 : vector<1x8x8xbf16> to vector<8x8xbf16>
    %64 = vector.extract_strided_slice %5 {offsets = [0, 1], sizes = [8, 64], strides = [1, 1]} : vector<8x66xbf16> to vector<8x64xbf16>
    %cst_50 = arith.constant dense<0.000000e+00> : vector<8x64xf32>
    %65 = tpu.matmul %63, %64, %cst_50 {dimension_numbers = #tpu.dot_dimension_numbers<[1], [0], [0], [1], [0, 0, 1, 1], [], []>} : vector<8x8xbf16>, vector<8x64xbf16>, vector<8x64xf32> -> vector<8x64xf32>
    %66 = arith.addf %61, %65 : vector<8x64xf32>
    %c11 = arith.constant 11 : index
    %c0_51 = arith.constant 0 : index
    %c0_52 = arith.constant 0 : index
    %67 = vector.load %arg5[%c11, %c0_51, %c0_52] : memref<12x8x8xbf16, #tpu.memory_space<vmem>>, vector<1x8x8xbf16>
    %68 = vector.shape_cast %67 : vector<1x8x8xbf16> to vector<8x8xbf16>
    %69 = vector.extract_strided_slice %5 {offsets = [0, 2], sizes = [8, 64], strides = [1, 1]} : vector<8x66xbf16> to vector<8x64xbf16>
    %cst_53 = arith.constant dense<0.000000e+00> : vector<8x64xf32>
    %70 = tpu.matmul %68, %69, %cst_53 {dimension_numbers = #tpu.dot_dimension_numbers<[1], [0], [0], [1], [0, 0, 1, 1], [], []>} : vector<8x8xbf16>, vector<8x64xbf16>, vector<8x64xf32> -> vector<8x64xf32>
    %71 = arith.addf %66, %70 : vector<8x64xf32>
    %72 = vector.broadcast %6 : vector<8x1xf32> to vector<8x64xf32>
    %73 = arith.addf %71, %72 : vector<8x64xf32>
    %cst_54 = arith.constant 0.000000e+00 : f32
    %74 = vector.broadcast %cst_54 : f32 to vector<8x64xf32>
    %75 = arith.maximumf %73, %74 : vector<8x64xf32>
    %c0_55 = arith.constant 0 : index
    %c1_56 = arith.constant 1 : index
    %c0_57 = arith.constant 0 : index
    %c0_58 = arith.constant 0 : index
    %76 = vector.load %arg7[%c0_55, %c1_56, %c0_57, %c0_58] : memref<1x2x8x64xf32, #tpu.memory_space<vmem>>, vector<1x1x8x64xf32>
    %77 = vector.shape_cast %76 : vector<1x1x8x64xf32> to vector<8x64xf32>
    %78 = vector.shape_cast %75 : vector<8x64xf32> to vector<1x1x8x64xf32>
    tpu.vector_store %arg7[%c0_55, %c1_56, %c0_57, %c0_58], %78 {strides = array<i32>} : memref<1x2x8x64xf32, #tpu.memory_space<vmem>>, vector<1x1x8x64xf32>,
    return
  }
  func.func @transform_0(%arg0: i32, %arg1: i32) -> (i32, i32, i32, i32) {
    %c0_i32 = arith.constant 0 : i32
    %c0_i32_0 = arith.constant 0 : i32
    %c0_i32_1 = arith.constant 0 : i32
    return %arg0, %arg1, %c0_i32, %c0_i32_0 : i32, i32, i32, i32
  }
  func.func @transform_1(%arg0: i32, %arg1: i32) -> (i32, i32, i32, i32) {
    %c1_i32 = arith.constant 1 : i32
    %0 = arith.addi %arg1, %c1_i32 : i32
    %c0_i32 = arith.constant 0 : i32
    %c0_i32_0 = arith.constant 0 : i32
    %c0_i32_1 = arith.constant 0 : i32
    return %arg0, %0, %c0_i32, %c0_i32_0 : i32, i32, i32, i32
  }
  func.func @transform_2(%arg0: i32, %arg1: i32) -> (i32, i32, i32, i32) {
    %c2_i32 = arith.constant 2 : i32
    %0 = arith.addi %arg1, %c2_i32 : i32
    %c0_i32 = arith.constant 0 : i32
    %c0_i32_0 = arith.constant 0 : i32
    %c0_i32_1 = arith.constant 0 : i32
    return %arg0, %0, %c0_i32, %c0_i32_0 : i32, i32, i32, i32
  }
  func.func @transform_3(%arg0: i32, %arg1: i32) -> (i32, i32, i32) {
    %c0_i32 = arith.constant 0 : i32
    %c0_i32_0 = arith.constant 0 : i32
    %c0_i32_1 = arith.constant 0 : i32
    %c0_i32_2 = arith.constant 0 : i32
    return %c0_i32, %c0_i32_0, %c0_i32_1 : i32, i32, i32
  }
  func.func @transform_4(%arg0: i32, %arg1: i32) -> (i32, i32) {
    %c0_i32 = arith.constant 0 : i32
    %c0_i32_0 = arith.constant 0 : i32
    %c0_i32_1 = arith.constant 0 : i32
    return %c0_i32, %c0_i32_0 : i32, i32
  }
  func.func @transform_5(%arg0: i32, %arg1: i32) -> (i32, i32, i32, i32) {
    %c0_i32 = arith.constant 0 : i32
    %c0_i32_0 = arith.constant 0 : i32
    %c0_i32_1 = arith.constant 0 : i32
    return %arg0, %arg1, %c0_i32, %c0_i32_0 : i32, i32, i32, i32
  }
}

</mosaic_0001>

<bundles_post_ra>
// kernel: decoder_forward.3
= control target key start
LH: loop header
LB: loop body
LE: loop exit
PB: predicated region body
PF: predicated region fallthrough
CT: control target
= control target key end

     0   :  { %s992_s18 = smov 0   ;;  %s994_s19 = smov 0   ;;  %s1124_s0 = inlined_call_operand.vmem [shape: bf16[2,10,32,18], index: 0, kind: input, shape index: {}, may-alias: {0,1,2}]   ;;  %s1125_s1 = inlined_call_operand.vmem [shape: bf16[2,10,32,18], index: 1, kind: input, shape index: {}, may-alias: {0,1,2}]   ;;  %s1126_s2 = inlined_call_operand.vmem [shape: bf16[2,10,32,18], index: 2, kind: input, shape index: {}, may-alias: {0,1,2}]   ;;  %s1127_s3 = inlined_call_operand.vmem [shape: bf16[12,8,32], index: 3, kind: input, shape index: {}]   ;;  %s1128_s4 = inlined_call_operand.vmem [shape: f32[8,1], index: 4, kind: input, shape index: {}]   ;;  %s1129_s5 = inlined_call_operand.vmem [shape: bf16[2,16,8,16], index: 5, kind: output, shape index: {}]  }
   0x1   :  { %s996_s20 = smov 0   ;;  %s998_s21 = smov 0  }
   0x2   :  { %s1000_s22 = smov 0  }
   0x3 LB: > { %s24_s23 = sadd.s32 1, %s949_s20  ;;  %s27_s24 = sadd.s32 1, %s953_s21  ;;  %s957_s22 = sphi %s1000_s22, %s15_s22   ;;  %s953_s21 = sphi %s998_s21, %s1133_s21   ;;  %s949_s20 = sphi %s996_s20, %s1132_s20   ;;  %s945_s19 = sphi %s994_s19, %s1131_s19   ;;  %s941_s18 = sphi %s992_s18, %s1130_s18  }
   0x4   : > { %p25_p0 = scmp.ge.s32.totalorder %s24_s23, 8  ;;  %p808_p1 = scmp.ge.s32.totalorder %s957_s22, 1 }
   0x5   : > { %p247_p2 = scmp.lt.s32.totalorder %s957_s22, 17 }
   0x6   : > { %s1135_s23 = smov (%p25_p0, %s24_s23), 0  ;;  %s1137_s24 = smov (!%p25_p0, %s27_s24), %s953_s21 }
   0x7   : > { %p248_p3 = pnand %p808_p1, %p247_p2  ;;  %p29_p4 = scmp.ge.s32.totalorder %s1137_s24, 2 }
   0x8   : > { %p303_p5 = scmp.lt.s32.totalorder (!%p248_p3), %s945_s19, 1  ;;  %p305_p6 = scmp.lt.s32.totalorder (!%p248_p3), %s941_s18, 9 }
   0x9   : > { %s1139_s24 = smov (%p29_p4, %s1137_s24), 0  ;;  %251 = sbr.rel (%p248_p3) target bundleno = 325 (0x145), region = 40 }
   0xa   : > { %s312_s27 = sadd.s32 (!%p248_p3), 1, %s941_s18  ;;  %s323_s9 = sadd.s32 (!%p248_p3), 2, %s941_s18 }
   0xb   : > { %p315_p7 = scmp.lt.s32.totalorder (!%p248_p3), %s312_s27, 9  ;;  %s959_s10 = smov (!%p248_p3), 126  }
   0xc   : > { %p326_p8 = scmp.lt.s32.totalorder (!%p248_p3), %s323_s9, 9  ;;  %s960_s17 = smov (!%p248_p3), 127  }
   0xd   : > { %s815_s14 = sshll.u32 (!%p248_p3), %s941_s18, 1 }
   0xe   : > { %s1141_s19 = smov (!%p303_p5, %s945_s19), 1  ;;  %s1143_s27 = smov (!%p315_p7, %s312_s27), 9  ;;  %vm377_vm0 = vcmask 261120   ;;  %v831_v6 = vld [vmem:[%s1127_s3 + $0xc] sm:$0xf]  ;;  %v357_v16 = vld [vmem:[%s1128_s4] sm:$0xff] }
   0xf   : > { %s306_s25 = scalar_select %p305_p6, %s941_s18, 9  ;;  %v358_v7 = vld [vmem:[%s1127_s3] sm:$0xf]  ;;  %v845_v9 = vld [vmem:[%s1127_s3 + $0x18] sm:$0xf]  ;;  %v961_v17 = vmov 0  }
  0x10   : > { %s1029_s26 = smul.u32 40, %s1141_s19  ;;  %s811_s11 = sshll.u32 %s1143_s27, 2  ;;  %v829_v13 = vld [vmem:[%s1127_s3 + $0x8] sm:$0xf]  ;;  %918 = vset.pattern.permute.xlu0 %v961_v17  ;;  %v818_v19 = vld [vmem:[%s1127_s3 + $0x4] sm:$0xf] }
  0x11   : > { %s809_s28 = sshll.u32 %s306_s25, 2  ;;  %s1145_s9 = smov (!%p326_p8, %s323_s9), 9  ;;  %v846_v22 = vld [vmem:[%s1127_s3 + $0x1c] sm:$0xf]  ;;  %v843_v23 = vld [vmem:[%s1127_s3 + $0x14] sm:$0xf] }
  0x12   : > { %s309_s29 = sadd.s32 %s1029_s26, %s809_s28  ;;  %s319_s12 = sadd.s32 %s1029_s26, %s811_s11  ;;  %v841_v27 = vld [vmem:[%s1127_s3 + $0x10] sm:$0xf]  ;;  %v863_v28 = vld [vmem:[%s1127_s3 + $0x2c] sm:$0xf]  ;;  %v861_v29 = vld [vmem:[%s1127_s3 + $0x28] sm:$0xf] }
  0x13   : > { %s810_s30 = sshll.u32 %s309_s29, 2  ;;  %s812_s13 = sshll.u32 %s319_s12, 2  ;;  %v851_v30 = vld [vmem:[%s1127_s3 + $0x24] sm:$0xf]  ;;  %v849_v31 = vld [vmem:[%s1127_s3 + $0x20] sm:$0xf] }
  0x14   : > { %s311_s8 = scalar_lea.vmem %s1124_s0, %s810_s30  ;;  %s321_s16 = scalar_lea.vmem %s1125_s1, %s812_s13  ;;  %vm526_vm1 = vcmask 125952  }
  0x15   : > { %v869_v0 = vld [vmem:[%s311_s8 + $0x8] sm:$0xff]  ;;  %v868_v1 = vld [vmem:[%s311_s8] sm:$0xff]  ;;  %s813_s25 = sshll.u32 %s1145_s9, 2  ;;  %p337_p9 = scmp.lt.s32.totalorder %s815_s14, 15 }
  0x16   : > { %416 = vrot.lane.b32.xlu0 %v869_v0, %s959_s10  ;;  %414 = vrot.lane.b32.xlu1 %v868_v1, %s959_s10  ;;  %v871_v2 = vld [vmem:[%s321_s16 + $0x8] sm:$0xff]  ;;  %v870_v3 = vld [vmem:[%s321_s16] sm:$0xff]  ;;  %s330_s27 = sadd.s32 %s1029_s26, %s813_s25  ;;  %s816_s15 = sshll.u32 %s1141_s19, 4 }
  0x17   : > { %405 = vmatpush.bf16.msra.mxu1 %v869_v0  ;;  %472 = vrot.lane.b32.xlu2 %v871_v2, %s960_s17  ;;  %s814_s28 = sshll.u32 %s330_s27, 2  ;;  %s1147_s14 = smov (!%p337_p9, %s815_s14), 15 }
  0x18   : > { %460 = vmatpush.bf16.msra.mxu3 %v871_v2  ;;  %s332_s6 = scalar_lea.vmem %s1126_s2, %s814_s28  ;;  %s340_s16 = sadd.s32 %s816_s15, %s1147_s14 }
  0x19   : > { %v873_v4 = vld [vmem:[%s332_s6 + $0x8] sm:$0xff]  ;;  %v872_v5 = vld [vmem:[%s332_s6] sm:$0xff] }
  0x1b   : > { %406 = vmatpush.bf16.msra.mxu1 %v868_v1 }
  0x1c   : > { %461 = vmatpush.bf16.msra.mxu3 %v870_v3 }
  0x1e   : > { %373 = vrot.lane.b32.xlu0 %v869_v0, %s960_s17  ;;  %371 = vrot.lane.b32.xlu1 %v868_v1, %s960_s17 }
  0x1f   : > { %470 = vrot.lane.b32.xlu2 %v870_v3, %s960_s17  ;;  %840 = vmatmul.msk.bf16.vlgmr.msra.gmra.mxu3 %vm377_vm0, %v831_v6 }
  0x20   : > { %557 = vmatpush.bf16.msrb.mxu3 %v871_v2  ;;  %828 = vmatmul.msk.bf16.vlgmr.msra.gmra.mxu1 %vm377_vm0, %v358_v7 }
  0x24   : > { %558 = vmatpush.bf16.msrb.mxu3 %v870_v3 }
  0x26   : > { %497 = vrot.lane.b32.xlu0 %v871_v2, %s959_s10  ;;  %495 = vrot.lane.b32.xlu1 %v870_v3, %s959_s10 }
  0x27   : > { %618 = vrot.lane.b32.xlu2 %v873_v4, %s960_s17 }
  0x2e   : > { %643 = vrot.lane.b32.xlu0 %v873_v4, %s959_s10  ;;  %616 = vrot.lane.b32.xlu1 %v872_v5, %s960_s17  ;;  %s817_s17 = sshll.u32 %s340_s16, 2 }
  0x2f   : > { %641 = vrot.lane.b32.xlu2 %v872_v5, %s959_s10  ;;  %848 = vmatmul.msk.bf16.vlgmr.msrb.gmra.mxu3 %vm377_vm0, %v845_v9  ;;  %s342_s27 = scalar_lea.vmem %s1129_s5, %s817_s17 }
  0x36   : > { %520 = vperm.xlu0 %918, %v357_v16  }
  0x71   : > { %v473_v8 = vpop.permute.xlu2 %472 }
  0x79   : > { %v471_v10 = vpop.permute.xlu2 %470 }
  0x81   : > { %v619_v18 = vpop.permute.xlu2 %618 }
  0x88   : > { %v417_v11 = vpop.permute.xlu0 %416  ;;  %v415_v12 = vpop.permute.xlu1 %414 }
  0x89   : > { %429 = vmatpush.bf16.msra.mxu2 %v417_v11  ;;  %v642_v26 = vpop.permute.xlu2 %641 }
  0x8d   : > { %430 = vmatpush.bf16.msra.mxu2 %v415_v12 }
  0x90   : > { %v374_v14 = vpop.permute.xlu0 %373  ;;  %830 = vmatmul.msk.bf16.vlgmr.msra.gmra.mxu2 %vm377_vm0, %v829_v13  ;;  %v372_v15 = vpop.permute.xlu1 %371 }
  0x91   : > { %541 = vmatpush.bf16.msrb.mxu2 %v473_v8  ;;  %387 = vmatpush.bf16.msra.mxu0 %v374_v14 }
  0x95   : > { %542 = vmatpush.bf16.msrb.mxu2 %v471_v10  ;;  %388 = vmatpush.bf16.msra.mxu0 %v372_v15 }
  0x98   : > { %827 = vmatmul.msk.bf16.vlgmr.msra.gmra.mxu0 %vm377_vm0, %v818_v19  ;;  %v498_v20 = vpop.permute.xlu0 %497  ;;  %v496_v21 = vpop.permute.xlu1 %495 }
  0x99   : > { %631 = vmatpush.bf16.msra.mxu2 %v619_v18  ;;  %485 = vmatpush.bf16.msrb.mxu0 %v473_v8 }
  0x9a   : > { %510 = vmatpush.bf16.msrb.mxu1 %v498_v20 }
  0x9d   : > { %486 = vmatpush.bf16.msrb.mxu0 %v471_v10  ;;  %v408_v32 = vpop.f32.mrf.mxu1 }
  0x9e   : > { %511 = vmatpush.bf16.msrb.mxu1 %v496_v21 }
  0xa0   : > { %847 = vmatmul.msk.bf16.vlgmr.msrb.gmra.mxu2 %vm377_vm0, %v846_v22  ;;  %v644_v24 = vpop.permute.xlu0 %643  ;;  %v617_v25 = vpop.permute.xlu1 %616 }
  0xa1   : > { %575 = vmatpush.bf16.msra.mxu0 %v498_v20  ;;  %844 = vmatmul.msk.bf16.vlgmr.msrb.gmra.mxu1 %vm377_vm0, %v843_v23 }
  0xa2   : > { %606 = vmatpush.bf16.msra.mxu1 %v873_v4  ;;  %656 = vmatpush.bf16.msra.mxu3 %v644_v24  ;;  %v463_v33 = vpop.f32.mrf.mxu3 }
  0xa3   : > { %632 = vmatpush.bf16.msra.mxu2 %v617_v25 }
  0xa5   : > { %576 = vmatpush.bf16.msra.mxu0 %v496_v21  ;;  %v410_v34 = vpop.f32.mrf.mxu1 }
  0xa6   : > { %607 = vmatpush.bf16.msra.mxu1 %v872_v5  ;;  %657 = vmatpush.bf16.msra.mxu3 %v642_v26 }
  0xa8   : > { %842 = vmatmul.msk.bf16.vlgmr.msrb.gmra.mxu0 %vm377_vm0, %v841_v27  ;;  %v521_v50 = vpop.permute.xlu0 %520 }
  0xa9   : > { %864 = vmatmul.msk.bf16.vlgmr.msra.gmra.mxu3 %vm377_vm0, %v863_v28 }
  0xaa   : > { %v465_v35 = vpop.f32.mrf.mxu3 }
  0xb0   : > { %862 = vmatmul.msk.bf16.vlgmr.msra.gmra.mxu2 %vm377_vm0, %v861_v29 }
  0xb1   : > { %860 = vmatmul.msk.bf16.vlgmr.msra.gmra.mxu1 %vm377_vm0, %v851_v30 }
  0xb2   : > { %v560_v36 = vpop.f32.mrf.mxu3 }
  0xb8   : > { %850 = vmatmul.msk.bf16.vlgmr.msra.gmra.mxu0 %vm377_vm0, %v849_v31 }
  0xba   : > { %v562_v37 = vpop.f32.mrf.mxu3 }
 0x113   : > { %v432_v38 = vpop.f32.mrf.mxu2 }
 0x115   : > { %v390_v39 = vpop.f32.mrf.mxu0 }
 0x116   : > { %v409_v41 = vadd.f32 %v408_v32, %v390_v39 }
 0x118   : > { %v436_v44 = vadd.f32 %v432_v38, %v409_v41 }
 0x11a   : > { %v467_v46 = vadd.f32 %v463_v33, %v436_v44 }
 0x11b   : > { %v434_v40 = vpop.f32.mrf.mxu2 }
 0x11d   : > { %v392_v42 = vpop.f32.mrf.mxu0 }
 0x11e   : > { %v513_v43 = vpop.f32.mrf.mxu1 }
 0x123   : > { %v544_v45 = vpop.f32.mrf.mxu2 }
 0x124   : > { %v561_v61 = vadd.f32 %v560_v36, %v544_v45 }
 0x125   : > { %v488_v47 = vpop.f32.mrf.mxu0 }
 0x126   : > { %v515_v48 = vpop.f32.mrf.mxu1  ;;  %v492_v49 = vadd.f32 %v488_v47, %v467_v46 }
 0x128   : > { %v517_v51 = vadd.f32 %v513_v43, %v492_v49 }
 0x12a   : > { %v523_v52 = vadd.f32 %v521_v50, %v517_v51 }
 0x12b   : > { %v546_v53 = vpop.f32.mrf.mxu2 }
 0x12c   : > { %v659_v54 = vpop.f32.mrf.mxu3  ;;  %v524_v55 = vmax.f32 %v523_v52, 0.0 }
 0x12d   : > { %v490_v56 = vpop.f32.mrf.mxu0 }
 0x12e   : > { %v609_v57 = vpop.f32.mrf.mxu1  ;;  %v525_v58 = vpack.c.bf16 %v524_v55, %v524_v55 }
 0x130   : > { %527 = vst.msk [vmem:[%s342_s27] sm:$0xf] %vm526_vm1, %v525_v58 }
 0x133   : > { %v634_v59 = vpop.f32.mrf.mxu2 }
 0x134   : > { %v661_v60 = vpop.f32.mrf.mxu3 }
 0x135   : > { %v578_v62 = vpop.f32.mrf.mxu0 }
 0x136   : > { %v611_v63 = vpop.f32.mrf.mxu1  ;;  %v582_v0 = vadd.f32 %v578_v62, %v561_v61 }
 0x138   : > { %v613_v1 = vadd.f32 %v609_v57, %v582_v0 }
 0x13a   : > { %v638_v2 = vadd.f32 %v634_v59, %v613_v1 }
 0x13b   : > { %v636_v3 = vpop.f32.mrf.mxu2 }
 0x13c   : > { %v663_v4 = vadd.f32 %v659_v54, %v638_v2 }
 0x13d   : > { %v580_v5 = vpop.f32.mrf.mxu0 }
 0x13e   : > { %v664_v6 = vadd.f32 %v663_v4, %v521_v50 }
 0x140   : > { %v665_v7 = vmax.f32 %v664_v6, 0.0 }
 0x142   : > { %v666_v8 = vpack.c.bf16 %v665_v7, %v665_v7 }
 0x144   : > { %865 = vst.msk [vmem:[%s342_s27 + $0x4] sm:$0xf] %vm526_vm1, %v666_v8 }
 0x145 PF: > { %s15_s22 = sadd.s32 1, %s957_s22   ;;  %s1130_s18 = smov %s949_s20 }
 0x146   : > { %p12_p10 = scmp.ge.s32.totalorder %s15_s22, 18   ;;  %s1131_s19 = smov %s953_s21 }
 0x147   : > { %s1132_s20 = smov %s1135_s23  ;;  %s1133_s21 = smov %s1139_s24 }
 0x148   :  { %14 = sbr.rel (!%p12_p10) target bundleno = 3 (0x3), region = 88 }

// kernel: decoder_forward.4
= control target key start
LH: loop header
LB: loop body
LE: loop exit
PB: predicated region body
PF: predicated region fallthrough
CT: control target
= control target key end

     0   :  { %s909_s18 = smov 0   ;;  %s911_s19 = smov 0   ;;  %s1039_s0 = inlined_call_operand.vmem [shape: bf16[2,18,8,34], index: 0, kind: input, shape index: {}, may-alias: {0,1,2}]   ;;  %s1040_s1 = inlined_call_operand.vmem [shape: bf16[2,18,8,34], index: 1, kind: input, shape index: {}, may-alias: {0,1,2}]   ;;  %s1041_s2 = inlined_call_operand.vmem [shape: bf16[2,18,8,34], index: 2, kind: input, shape index: {}, may-alias: {0,1,2}]   ;;  %s1042_s3 = inlined_call_operand.vmem [shape: bf16[12,8,8], index: 3, kind: input, shape index: {}]   ;;  %s1043_s4 = inlined_call_operand.vmem [shape: f32[8,1], index: 4, kind: input, shape index: {}]   ;;  %s1044_s5 = inlined_call_operand.vmem [shape: bf16[2,32,8,32], index: 5, kind: output, shape index: {}]  }
   0x1   :  { %s913_s20 = smov 0   ;;  %s915_s21 = smov 0  }
   0x2   :  { %s917_s22 = smov 0  }
   0x3 LB: > { %s24_s23 = sadd.s32 1, %s866_s20  ;;  %s27_s24 = sadd.s32 1, %s870_s21  ;;  %s874_s22 = sphi %s917_s22, %s15_s22   ;;  %s870_s21 = sphi %s915_s21, %s1048_s21   ;;  %s866_s20 = sphi %s913_s20, %s1047_s20   ;;  %s862_s19 = sphi %s911_s19, %s1046_s19   ;;  %s858_s18 = sphi %s909_s18, %s1045_s18  }
   0x4   : > { %p25_p0 = scmp.ge.s32.totalorder %s24_s23, 16  ;;  %p758_p1 = scmp.ge.s32.totalorder %s874_s22, 1 }
   0x5   : > { %p244_p2 = scmp.lt.s32.totalorder %s874_s22, 33 }
   0x6   : > { %s1050_s23 = smov (%p25_p0, %s24_s23), 0  ;;  %s1052_s24 = smov (!%p25_p0, %s27_s24), %s870_s21 }
   0x7   : > { %p245_p3 = pnand %p758_p1, %p244_p2  ;;  %p29_p4 = scmp.ge.s32.totalorder %s1052_s24, 2 }
   0x8   : > { %p297_p5 = scmp.lt.s32.totalorder (!%p245_p3), %s862_s19, 1  ;;  %p299_p6 = scmp.lt.s32.totalorder (!%p245_p3), %s858_s18, 17 }
   0x9   : > { %s1054_s24 = smov (%p29_p4, %s1052_s24), 0  ;;  %248 = sbr.rel (%p245_p3) target bundleno = 326 (0x146), region = 40 }
   0xa   : > { %s305_s25 = sadd.s32 (!%p245_p3), 1, %s858_s18  ;;  %s315_s28 = sadd.s32 (!%p245_p3), 2, %s858_s18 }
   0xb   : > { %p308_p7 = scmp.lt.s32.totalorder (!%p245_p3), %s305_s25, 17  ;;  %p318_p8 = scmp.lt.s32.totalorder (!%p245_p3), %s315_s28, 17 }
   0xc   : > { %s876_s16 = smov (!%p245_p3), 126  }
   0xe   : > { %s1056_s19 = smov (!%p297_p5, %s862_s19), 1  ;;  %s1058_s25 = smov (!%p308_p7, %s305_s25), 17  ;;  %vm352_vm0 = vcmask 1043456   ;;  %vm348_vm1 = vcmask 64512   ;;  %v770_v11 = vld [vmem:[%s1042_s3 + $0xc] sm:$0xf] }
   0xf   : > { %s300_s26 = scalar_select %p299_p6, %s858_s18, 17  ;;  %v340_v12 = vld [vmem:[%s1042_s3] sm:$0xf]  ;;  %v776_v14 = vld [vmem:[%s1042_s3 + $0x18] sm:$0xf]  ;;  %v878_v25 = vmov 0  }
  0x10   : > { %s791_s27 = smul.u32 18, %s1056_s19  ;;  %s1060_s28 = smov (!%p318_p8, %s315_s28), 17  ;;  %v768_v19 = vld [vmem:[%s1042_s3 + $0x8] sm:$0xf]  ;;  %v786_v20 = vld [vmem:[%s1042_s3 + $0x2c] sm:$0xf]  ;;  %835 = vset.pattern.permute.xlu0 %v878_v25 }
  0x11   : > { %v339_v23 = vld [vmem:[%s1043_s4] sm:$0xff]  ;;  %v774_v32 = vld [vmem:[%s1042_s3 + $0x14] sm:$0xf]  ;;  %v777_v33 = vld [vmem:[%s1042_s3 + $0x1c] sm:$0xf]  ;;  %s763_s12 = sshll.u32 %s1056_s19, 5 }
  0x12   : > { %s302_s29 = sadd.s32 %s791_s27, %s300_s26  ;;  %s311_s9 = sadd.s32 %s791_s27, %s1058_s25  ;;  %v765_v28 = vld [vmem:[%s1042_s3 + $0x4] sm:$0xf]  ;;  %v772_v34 = vld [vmem:[%s1042_s3 + $0x10] sm:$0xf]  ;;  %v784_v36 = vld [vmem:[%s1042_s3 + $0x28] sm:$0xf] }
  0x13   : > { %s759_s30 = sshll.u32 %s302_s29, 2  ;;  %s760_s10 = sshll.u32 %s311_s9, 2  ;;  %v782_v35 = vld [vmem:[%s1042_s3 + $0x24] sm:$0xf]  ;;  %v780_v37 = vld [vmem:[%s1042_s3 + $0x20] sm:$0xf] }
  0x14   : > { %s304_s8 = scalar_lea.vmem %s1039_s0, %s759_s30  ;;  %s321_s11 = sadd.s32 %s791_s27, %s1060_s28  ;;  %vm493_vm2 = vcmask 257024  }
  0x15   : > { %v336_v0 = vld [vmem:[%s304_s8] sm:$0xf]  ;;  %s313_s14 = scalar_lea.vmem %s1040_s1, %s760_s10  ;;  %s761_s15 = sshll.u32 %s321_s11, 2 }
  0x16   : > { %v344_v1 = vunpack.c.l.b16 %v336_v0  ;;  %v337_v3 = vld [vmem:[%s313_s14] sm:$0xf]  ;;  %s323_s29 = scalar_lea.vmem %s1041_s2, %s761_s15  ;;  %s877_s25 = smov 127   ;;  %v373_v10 = vsel %vm352_vm0, %v336_v0, 0 }
  0x17   : > { %v437_v4 = vunpack.c.l.b16 %v337_v3  ;;  %v338_v5 = vld [vmem:[%s323_s29] sm:$0xf]  ;;  %v418_v9 = vsel %vm352_vm0, %v337_v3, 0  ;;  %382 = vmatpush.bf16.msra.mxu1 %v373_v10  ;;  %s762_s11 = sshll.u32 %s858_s18, 1 }
  0x18   : > { %v345_v2 = vpack.c.b16 %v344_v1, %v344_v1  ;;  %v575_v6 = vunpack.c.l.b16 %v338_v5  ;;  %427 = vmatpush.bf16.msra.mxu3 %v418_v9  ;;  %v556_v30 = vsel %vm352_vm0, %v338_v5, 0  ;;  %p328_p9 = scmp.lt.s32.totalorder %s762_s11, 31 }
  0x19   : > { %v438_v7 = vpack.c.b16 %v437_v4, %v437_v4 }
  0x1a   : > { %390 = vrot.lane.b32.xlu0 %v345_v2, %s876_s16  ;;  %v576_v8 = vpack.c.b16 %v575_v6, %v575_v6  ;;  %767 = vmatmul.msk.bf16.vlgmr.msra.gmra.mxu1 %vm348_vm1, %v340_v12  ;;  %s1062_s11 = smov (!%p328_p9, %s762_s11), 31 }
  0x1b   : > { %439 = vrot.lane.b32.xlu1 %v438_v7, %s877_s25  ;;  %771 = vmatmul.msk.bf16.vlgmr.msra.gmra.mxu3 %vm348_vm1, %v770_v11  ;;  %s331_s13 = sadd.s32 %s763_s12, %s1062_s11 }
  0x1c   : > { %577 = vrot.lane.b32.xlu2 %v576_v8, %s877_s25  ;;  %525 = vmatpush.bf16.msrb.mxu3 %v418_v9  ;;  %s764_s14 = sshll.u32 %s331_s13, 2 }
  0x22   : > { %346 = vrot.lane.b32.xlu0 %v345_v2, %s877_s25 }
  0x23   : > { %463 = vrot.lane.b32.xlu1 %v438_v7, %s876_s16 }
  0x24   : > { %601 = vrot.lane.b32.xlu2 %v576_v8, %s876_s16  ;;  %s333_s16 = scalar_lea.vmem %s1044_s5, %s764_s14 }
  0x2a   : > { %487 = vperm.xlu0 %835, %v339_v23  }
  0x2b   : > { %779 = vmatmul.msk.bf16.vlgmr.msrb.gmra.mxu3 %vm348_vm1, %v776_v14 }
  0x76   : > { %v578_v13 = vpop.permute.xlu2 %577 }
  0x77   : > { %v583_v22 = vsel %vm352_vm0, %v578_v13, 0 }
  0x7e   : > { %v602_v15 = vpop.permute.xlu2 %601 }
  0x7f   : > { %v607_v16 = vsel %vm352_vm0, %v602_v15, 0 }
  0x80   : > { %616 = vmatpush.bf16.msra.mxu3 %v607_v16 }
  0x83   : > { %787 = vmatmul.msk.bf16.vlgmr.msra.gmra.mxu3 %vm348_vm1, %v786_v20 }
  0x8c   : > { %v391_v17 = vpop.permute.xlu0 %390 }
  0x8d   : > { %v396_v18 = vsel %vm352_vm0, %v391_v17, 0  ;;  %v440_v21 = vpop.permute.xlu1 %439 }
  0x8e   : > { %405 = vmatpush.bf16.msra.mxu2 %v396_v18  ;;  %v445_v24 = vsel %vm352_vm0, %v440_v21, 0 }
  0x91   : > { %769 = vmatmul.msk.bf16.vlgmr.msra.gmra.mxu2 %vm348_vm1, %v768_v19 }
  0x92   : > { %509 = vmatpush.bf16.msrb.mxu2 %v445_v24 }
  0x94   : > { %v347_v26 = vpop.permute.xlu0 %346 }
  0x95   : > { %v354_v27 = vsel %vm352_vm0, %v347_v26, 0  ;;  %v464_v29 = vpop.permute.xlu1 %463 }
  0x96   : > { %592 = vmatpush.bf16.msra.mxu2 %v583_v22  ;;  %363 = vmatpush.bf16.msra.mxu0 %v354_v27  ;;  %v469_v31 = vsel %vm352_vm0, %v464_v29, 0 }
  0x97   : > { %478 = vmatpush.bf16.msrb.mxu1 %v469_v31  ;;  %v384_v38 = vpop.f32.mrf.mxu1 }
  0x99   : > { %766 = vmatmul.msk.bf16.vlgmr.msra.gmra.mxu0 %vm348_vm1, %v765_v28 }
  0x9a   : > { %454 = vmatpush.bf16.msrb.mxu0 %v445_v24  ;;  %775 = vmatmul.msk.bf16.vlgmr.msrb.gmra.mxu1 %vm348_vm1, %v774_v32 }
  0x9b   : > { %565 = vmatpush.bf16.msra.mxu1 %v556_v30 }
  0x9c   : > { %v488_v58 = vpop.permute.xlu0 %487 }
  0x9e   : > { %543 = vmatpush.bf16.msra.mxu0 %v469_v31  ;;  %v429_v39 = vpop.f32.mrf.mxu3 }
  0x9f   : > { %v386_v40 = vpop.f32.mrf.mxu1 }
  0xa1   : > { %778 = vmatmul.msk.bf16.vlgmr.msrb.gmra.mxu2 %vm348_vm1, %v777_v33 }
  0xa6   : > { %v431_v41 = vpop.f32.mrf.mxu3 }
  0xa9   : > { %773 = vmatmul.msk.bf16.vlgmr.msrb.gmra.mxu0 %vm348_vm1, %v772_v34 }
  0xaa   : > { %783 = vmatmul.msk.bf16.vlgmr.msra.gmra.mxu1 %vm348_vm1, %v782_v35 }
  0xae   : > { %v527_v42 = vpop.f32.mrf.mxu3 }
  0xb1   : > { %785 = vmatmul.msk.bf16.vlgmr.msra.gmra.mxu2 %vm348_vm1, %v784_v36 }
  0xb6   : > { %v529_v43 = vpop.f32.mrf.mxu3 }
  0xb9   : > { %781 = vmatmul.msk.bf16.vlgmr.msra.gmra.mxu0 %vm348_vm1, %v780_v37 }
 0x106   : > { %v618_v45 = vpop.f32.mrf.mxu3 }
 0x10e   : > { %v620_v49 = vpop.f32.mrf.mxu3 }
 0x114   : > { %v407_v44 = vpop.f32.mrf.mxu2 }
 0x116   : > { %v365_v46 = vpop.f32.mrf.mxu0 }
 0x117   : > { %v480_v47 = vpop.f32.mrf.mxu1  ;;  %v385_v50 = vadd.f32 %v384_v38, %v365_v46 }
 0x119   : > { %v411_v52 = vadd.f32 %v407_v44, %v385_v50 }
 0x11b   : > { %v433_v55 = vadd.f32 %v429_v39, %v411_v52 }
 0x11c   : > { %v409_v48 = vpop.f32.mrf.mxu2 }
 0x11e   : > { %v367_v51 = vpop.f32.mrf.mxu0 }
 0x11f   : > { %v482_v53 = vpop.f32.mrf.mxu1 }
 0x124   : > { %v511_v54 = vpop.f32.mrf.mxu2 }
 0x125   : > { %v528_v4 = vadd.f32 %v527_v42, %v511_v54 }
 0x126   : > { %v456_v56 = vpop.f32.mrf.mxu0 }
 0x127   : > { %v460_v57 = vadd.f32 %v456_v56, %v433_v55  ;;  %v567_v61 = vpop.f32.mrf.mxu1 }
 0x129   : > { %v484_v59 = vadd.f32 %v480_v47, %v460_v57 }
 0x12b   : > { %v490_v60 = vadd.f32 %v488_v58, %v484_v59 }
 0x12c   : > { %v513_v62 = vpop.f32.mrf.mxu2 }
 0x12d   : > { %v491_v63 = vmax.f32 %v490_v60, 0.0 }
 0x12e   : > { %v458_v0 = vpop.f32.mrf.mxu0 }
 0x12f   : > { %v492_v1 = vpack.c.bf16 %v491_v63, %v491_v63  ;;  %v569_v2 = vpop.f32.mrf.mxu1 }
 0x131   : > { %494 = vst.msk [vmem:[%s333_s16] sm:$0xf] %vm493_vm2, %v492_v1 }
 0x134   : > { %v594_v3 = vpop.f32.mrf.mxu2 }
 0x136   : > { %v545_v5 = vpop.f32.mrf.mxu0 }
 0x137   : > { %v549_v6 = vadd.f32 %v545_v5, %v528_v4 }
 0x139   : > { %v571_v7 = vadd.f32 %v567_v61, %v549_v6 }
 0x13b   : > { %v598_v8 = vadd.f32 %v594_v3, %v571_v7 }
 0x13c   : > { %v596_v9 = vpop.f32.mrf.mxu2 }
 0x13d   : > { %v622_v10 = vadd.f32 %v618_v45, %v598_v8 }
 0x13e   : > { %v547_v11 = vpop.f32.mrf.mxu0 }
 0x13f   : > { %v623_v12 = vadd.f32 %v622_v10, %v488_v58 }
 0x141   : > { %v624_v13 = vmax.f32 %v623_v12, 0.0 }
 0x143   : > { %v625_v14 = vpack.c.bf16 %v624_v13, %v624_v13 }
 0x145   : > { %788 = vst.msk [vmem:[%s333_s16 + $0x4] sm:$0xf] %vm493_vm2, %v625_v14 }
 0x146 PF: > { %s15_s22 = sadd.s32 1, %s874_s22   ;;  %s1045_s18 = smov %s866_s20 }
 0x147   : > { %p12_p10 = scmp.ge.s32.totalorder %s15_s22, 34   ;;  %s1046_s19 = smov %s870_s21 }
 0x148   : > { %s1047_s20 = smov %s1050_s23  ;;  %s1048_s21 = smov %s1054_s24 }
 0x149   :  { %14 = sbr.rel (!%p12_p10) target bundleno = 3 (0x3), region = 88 }

// kernel: decoder_forward.5
= control target key start
LH: loop header
LB: loop body
LE: loop exit
PB: predicated region body
PF: predicated region fallthrough
CT: control target
= control target key end

     0   :  { %s907_s18 = smov 0   ;;  %s909_s19 = smov 0   ;;  %s1037_s0 = inlined_call_operand.vmem [shape: bf16[2,34,8,66], index: 0, kind: input, shape index: {}, may-alias: {0,1,2}]   ;;  %s1038_s1 = inlined_call_operand.vmem [shape: bf16[2,34,8,66], index: 1, kind: input, shape index: {}, may-alias: {0,1,2}]   ;;  %s1039_s2 = inlined_call_operand.vmem [shape: bf16[2,34,8,66], index: 2, kind: input, shape index: {}, may-alias: {0,1,2}]   ;;  %s1040_s3 = inlined_call_operand.vmem [shape: bf16[12,8,8], index: 3, kind: input, shape index: {}]   ;;  %s1041_s4 = inlined_call_operand.vmem [shape: f32[8,1], index: 4, kind: input, shape index: {}]   ;;  %s1042_s5 = inlined_call_operand.vmem [shape: f32[2,64,8,64], index: 5, kind: output, shape index: {}]  }
   0x1   :  { %s911_s20 = smov 0   ;;  %s913_s21 = smov 0  }
   0x2   :  { %s915_s22 = smov 0  }
   0x3 LB: > { %s24_s23 = sadd.s32 1, %s864_s20  ;;  %s27_s24 = sadd.s32 1, %s868_s21  ;;  %s872_s22 = sphi %s915_s22, %s15_s22   ;;  %s868_s21 = sphi %s913_s21, %s1046_s21   ;;  %s864_s20 = sphi %s911_s20, %s1045_s20   ;;  %s860_s19 = sphi %s909_s19, %s1044_s19   ;;  %s856_s18 = sphi %s907_s18, %s1043_s18  }
   0x4   : > { %p25_p0 = scmp.ge.s32.totalorder %s24_s23, 32  ;;  %p756_p1 = scmp.ge.s32.totalorder %s872_s22, 1 }
   0x5   : > { %p244_p2 = scmp.lt.s32.totalorder %s872_s22, 65 }
   0x6   : > { %s1048_s23 = smov (%p25_p0, %s24_s23), 0  ;;  %s1050_s24 = smov (!%p25_p0, %s27_s24), %s868_s21 }
   0x7   : > { %p245_p3 = pnand %p756_p1, %p244_p2  ;;  %p29_p4 = scmp.ge.s32.totalorder %s1050_s24, 2 }
   0x8   : > { %p297_p5 = scmp.lt.s32.totalorder (!%p245_p3), %s860_s19, 1  ;;  %p299_p6 = scmp.lt.s32.totalorder (!%p245_p3), %s856_s18, 33 }
   0x9   : > { %s1052_s24 = smov (%p29_p4, %s1050_s24), 0  ;;  %248 = sbr.rel (%p245_p3) target bundleno = 324 (0x144), region = 40 }
   0xa   : > { %s305_s25 = sadd.s32 (!%p245_p3), 1, %s856_s18  ;;  %s315_s28 = sadd.s32 (!%p245_p3), 2, %s856_s18 }
   0xb   : > { %p308_p7 = scmp.lt.s32.totalorder (!%p245_p3), %s305_s25, 33  ;;  %p318_p8 = scmp.lt.s32.totalorder (!%p245_p3), %s315_s28, 33 }
   0xc   : > { %s874_s16 = smov (!%p245_p3), 126  }
   0xe   : > { %s1054_s19 = smov (!%p297_p5, %s860_s19), 1  ;;  %s1056_s25 = smov (!%p308_p7, %s305_s25), 33  ;;  %vm352_vm0 = vcmask 1043456   ;;  %vm348_vm1 = vcmask 64512   ;;  %v768_v11 = vld [vmem:[%s1040_s3 + $0xc] sm:$0xf] }
   0xf   : > { %s300_s26 = scalar_select %p299_p6, %s856_s18, 33  ;;  %v340_v12 = vld [vmem:[%s1040_s3] sm:$0xf]  ;;  %v774_v14 = vld [vmem:[%s1040_s3 + $0x18] sm:$0xf]  ;;  %v876_v25 = vmov 0  }
  0x10   : > { %s789_s27 = smul.u32 34, %s1054_s19  ;;  %s1058_s28 = smov (!%p318_p8, %s315_s28), 33  ;;  %v784_v19 = vld [vmem:[%s1040_s3 + $0x2c] sm:$0xf]  ;;  %v766_v20 = vld [vmem:[%s1040_s3 + $0x8] sm:$0xf]  ;;  %833 = vset.pattern.permute.xlu0 %v876_v25 }
  0x11   : > { %v339_v23 = vld [vmem:[%s1041_s4] sm:$0xff]  ;;  %v772_v32 = vld [vmem:[%s1040_s3 + $0x14] sm:$0xf]  ;;  %v775_v33 = vld [vmem:[%s1040_s3 + $0x1c] sm:$0xf]  ;;  %s761_s12 = sshll.u32 %s1054_s19, 6 }
  0x12   : > { %s302_s29 = sadd.s32 %s789_s27, %s300_s26  ;;  %s311_s9 = sadd.s32 %s789_s27, %s1056_s25  ;;  %v763_v28 = vld [vmem:[%s1040_s3 + $0x4] sm:$0xf]  ;;  %v770_v34 = vld [vmem:[%s1040_s3 + $0x10] sm:$0xf]  ;;  %v782_v36 = vld [vmem:[%s1040_s3 + $0x28] sm:$0xf] }
  0x13   : > { %s757_s30 = sshll.u32 %s302_s29, 2  ;;  %s758_s10 = sshll.u32 %s311_s9, 2  ;;  %v780_v35 = vld [vmem:[%s1040_s3 + $0x24] sm:$0xf]  ;;  %v778_v37 = vld [vmem:[%s1040_s3 + $0x20] sm:$0xf] }
  0x14   : > { %s304_s8 = scalar_lea.vmem %s1037_s0, %s757_s30  ;;  %s321_s11 = sadd.s32 %s789_s27, %s1058_s28  ;;  %vm492_vm2 = vcmask 523264  }
  0x15   : > { %v336_v0 = vld [vmem:[%s304_s8] sm:$0xf]  ;;  %s313_s14 = scalar_lea.vmem %s1038_s1, %s758_s10  ;;  %s759_s15 = sshll.u32 %s321_s11, 2 }
  0x16   : > { %v344_v1 = vunpack.c.l.b16 %v336_v0  ;;  %v337_v3 = vld [vmem:[%s313_s14] sm:$0xf]  ;;  %s323_s29 = scalar_lea.vmem %s1039_s2, %s759_s15  ;;  %s875_s25 = smov 127   ;;  %v373_v10 = vsel %vm352_vm0, %v336_v0, 0 }
  0x17   : > { %v437_v4 = vunpack.c.l.b16 %v337_v3  ;;  %v338_v5 = vld [vmem:[%s323_s29] sm:$0xf]  ;;  %v418_v9 = vsel %vm352_vm0, %v337_v3, 0  ;;  %382 = vmatpush.bf16.msra.mxu1 %v373_v10  ;;  %s760_s11 = sshll.u32 %s856_s18, 1 }
  0x18   : > { %v345_v2 = vpack.c.b16 %v344_v1, %v344_v1  ;;  %v574_v6 = vunpack.c.l.b16 %v338_v5  ;;  %427 = vmatpush.bf16.msra.mxu3 %v418_v9  ;;  %v555_v30 = vsel %vm352_vm0, %v338_v5, 0  ;;  %p328_p9 = scmp.lt.s32.totalorder %s760_s11, 63 }
  0x19   : > { %v438_v7 = vpack.c.b16 %v437_v4, %v437_v4 }
  0x1a   : > { %390 = vrot.lane.b32.xlu0 %v345_v2, %s874_s16  ;;  %v575_v8 = vpack.c.b16 %v574_v6, %v574_v6  ;;  %765 = vmatmul.msk.bf16.vlgmr.msra.gmra.mxu1 %vm348_vm1, %v340_v12  ;;  %s1060_s11 = smov (!%p328_p9, %s760_s11), 63 }
  0x1b   : > { %439 = vrot.lane.b32.xlu1 %v438_v7, %s875_s25  ;;  %769 = vmatmul.msk.bf16.vlgmr.msra.gmra.mxu3 %vm348_vm1, %v768_v11  ;;  %s331_s13 = sadd.s32 %s761_s12, %s1060_s11 }
  0x1c   : > { %576 = vrot.lane.b32.xlu2 %v575_v8, %s875_s25  ;;  %524 = vmatpush.bf16.msrb.mxu3 %v418_v9  ;;  %s762_s14 = sshll.u32 %s331_s13, 3 }
  0x22   : > { %346 = vrot.lane.b32.xlu0 %v345_v2, %s875_s25 }
  0x23   : > { %463 = vrot.lane.b32.xlu1 %v438_v7, %s874_s16 }
  0x24   : > { %600 = vrot.lane.b32.xlu2 %v575_v8, %s874_s16  ;;  %s333_s16 = scalar_lea.vmem %s1042_s5, %s762_s14 }
  0x2a   : > { %487 = vperm.xlu0 %833, %v339_v23  }
  0x2b   : > { %777 = vmatmul.msk.bf16.vlgmr.msrb.gmra.mxu3 %vm348_vm1, %v774_v14 }
  0x76   : > { %v577_v13 = vpop.permute.xlu2 %576 }
  0x77   : > { %v582_v22 = vsel %vm352_vm0, %v577_v13, 0 }
  0x7e   : > { %v601_v15 = vpop.permute.xlu2 %600 }
  0x7f   : > { %v606_v16 = vsel %vm352_vm0, %v601_v15, 0 }
  0x80   : > { %615 = vmatpush.bf16.msra.mxu3 %v606_v16 }
  0x83   : > { %785 = vmatmul.msk.bf16.vlgmr.msra.gmra.mxu3 %vm348_vm1, %v784_v19 }
  0x8c   : > { %v391_v17 = vpop.permute.xlu0 %390 }
  0x8d   : > { %v396_v18 = vsel %vm352_vm0, %v391_v17, 0  ;;  %v440_v21 = vpop.permute.xlu1 %439 }
  0x8e   : > { %405 = vmatpush.bf16.msra.mxu2 %v396_v18  ;;  %v445_v24 = vsel %vm352_vm0, %v440_v21, 0 }
  0x91   : > { %767 = vmatmul.msk.bf16.vlgmr.msra.gmra.mxu2 %vm348_vm1, %v766_v20 }
  0x92   : > { %508 = vmatpush.bf16.msrb.mxu2 %v445_v24 }
  0x94   : > { %v347_v26 = vpop.permute.xlu0 %346 }
  0x95   : > { %v354_v27 = vsel %vm352_vm0, %v347_v26, 0  ;;  %v464_v29 = vpop.permute.xlu1 %463 }
  0x96   : > { %591 = vmatpush.bf16.msra.mxu2 %v582_v22  ;;  %363 = vmatpush.bf16.msra.mxu0 %v354_v27  ;;  %v469_v31 = vsel %vm352_vm0, %v464_v29, 0 }
  0x97   : > { %478 = vmatpush.bf16.msrb.mxu1 %v469_v31  ;;  %v384_v38 = vpop.f32.mrf.mxu1 }
  0x99   : > { %764 = vmatmul.msk.bf16.vlgmr.msra.gmra.mxu0 %vm348_vm1, %v763_v28 }
  0x9a   : > { %454 = vmatpush.bf16.msrb.mxu0 %v445_v24  ;;  %773 = vmatmul.msk.bf16.vlgmr.msrb.gmra.mxu1 %vm348_vm1, %v772_v32 }
  0x9b   : > { %564 = vmatpush.bf16.msra.mxu1 %v555_v30 }
  0x9c   : > { %v488_v58 = vpop.permute.xlu0 %487 }
  0x9e   : > { %542 = vmatpush.bf16.msra.mxu0 %v469_v31  ;;  %v429_v39 = vpop.f32.mrf.mxu3 }
  0x9f   : > { %v386_v40 = vpop.f32.mrf.mxu1 }
  0xa1   : > { %776 = vmatmul.msk.bf16.vlgmr.msrb.gmra.mxu2 %vm348_vm1, %v775_v33 }
  0xa6   : > { %v431_v41 = vpop.f32.mrf.mxu3 }
  0xa9   : > { %771 = vmatmul.msk.bf16.vlgmr.msrb.gmra.mxu0 %vm348_vm1, %v770_v34 }
  0xaa   : > { %781 = vmatmul.msk.bf16.vlgmr.msra.gmra.mxu1 %vm348_vm1, %v780_v35 }
  0xae   : > { %v526_v42 = vpop.f32.mrf.mxu3 }
  0xb1   : > { %783 = vmatmul.msk.bf16.vlgmr.msra.gmra.mxu2 %vm348_vm1, %v782_v36 }
  0xb6   : > { %v528_v43 = vpop.f32.mrf.mxu3 }
  0xb9   : > { %779 = vmatmul.msk.bf16.vlgmr.msra.gmra.mxu0 %vm348_vm1, %v778_v37 }
 0x106   : > { %v617_v44 = vpop.f32.mrf.mxu3 }
 0x10e   : > { %v619_v48 = vpop.f32.mrf.mxu3 }
 0x114   : > { %v407_v45 = vpop.f32.mrf.mxu2 }
 0x116   : > { %v365_v46 = vpop.f32.mrf.mxu0 }
 0x117   : > { %v480_v47 = vpop.f32.mrf.mxu1  ;;  %v385_v50 = vadd.f32 %v384_v38, %v365_v46 }
 0x119   : > { %v411_v52 = vadd.f32 %v407_v45, %v385_v50 }
 0x11b   : > { %v433_v55 = vadd.f32 %v429_v39, %v411_v52 }
 0x11c   : > { %v409_v49 = vpop.f32.mrf.mxu2 }
 0x11e   : > { %v367_v51 = vpop.f32.mrf.mxu0 }
 0x11f   : > { %v482_v53 = vpop.f32.mrf.mxu1 }
 0x124   : > { %v510_v54 = vpop.f32.mrf.mxu2 }
 0x125   : > { %v527_v3 = vadd.f32 %v526_v42, %v510_v54 }
 0x126   : > { %v456_v56 = vpop.f32.mrf.mxu0 }
 0x127   : > { %v460_v57 = vadd.f32 %v456_v56, %v433_v55  ;;  %v566_v61 = vpop.f32.mrf.mxu1 }
 0x129   : > { %v484_v59 = vadd.f32 %v480_v47, %v460_v57 }
 0x12b   : > { %v490_v60 = vadd.f32 %v488_v58, %v484_v59 }
 0x12c   : > { %v512_v62 = vpop.f32.mrf.mxu2 }
 0x12d   : > { %v491_v63 = vmax.f32 %v490_v60, 0.0 }
 0x12e   : > { %v458_v0 = vpop.f32.mrf.mxu0 }
 0x12f   : > { %493 = vst.msk [vmem:[%s333_s16] sm:$0xff] %vm492_vm2, %v491_v63  ;;  %v568_v1 = vpop.f32.mrf.mxu1 }
 0x134   : > { %v593_v2 = vpop.f32.mrf.mxu2 }
 0x136   : > { %v544_v4 = vpop.f32.mrf.mxu0 }
 0x137   : > { %v548_v5 = vadd.f32 %v544_v4, %v527_v3 }
 0x139   : > { %v570_v6 = vadd.f32 %v566_v61, %v548_v5 }
 0x13b   : > { %v597_v7 = vadd.f32 %v593_v2, %v570_v6 }
 0x13c   : > { %v595_v8 = vpop.f32.mrf.mxu2 }
 0x13d   : > { %v621_v9 = vadd.f32 %v617_v44, %v597_v7 }
 0x13e   : > { %v546_v10 = vpop.f32.mrf.mxu0 }
 0x13f   : > { %v622_v11 = vadd.f32 %v621_v9, %v488_v58 }
 0x141   : > { %v623_v12 = vmax.f32 %v622_v11, 0.0 }
 0x143   : > { %786 = vst.msk [vmem:[%s333_s16 + $0x8] sm:$0xff] %vm492_vm2, %v623_v12 }
 0x144 PF: > { %s15_s22 = sadd.s32 1, %s872_s22   ;;  %s1043_s18 = smov %s864_s20 }
 0x145   : > { %p12_p10 = scmp.ge.s32.totalorder %s15_s22, 66   ;;  %s1044_s19 = smov %s868_s21 }
 0x146   : > { %s1045_s20 = smov %s1048_s23  ;;  %s1046_s21 = smov %s1052_s24 }
 0x147   :  { %14 = sbr.rel (!%p12_p10) target bundleno = 3 (0x3), region = 88 }

</bundles_post_ra>
